<compile_context>
chip_gen: v6e
topology: v6e:2x2x1
jax: 0.10.0
libtpu: 0.0.40
codegen_flags: <defaults>
</compile_context>

<pallas_src>
import jax
import jax.numpy as jnp
import numpy as np
from jax.experimental import pallas as pl
from jax.experimental.pallas import tpu as pltpu

C1 = 16   # out channels of first Conv1d
C2 = 32   # out channels of second Conv1d


def _round_up(v, m):
    return ((v + m - 1) // m) * m


# ----------------------------------------------------------------------------
# Kernel 1 (one-shot): MLP + conv stack -> c2 : (B_pad, C2*L) in bf16.
# Runs once; everything here is P-invariant.
# ----------------------------------------------------------------------------
def chain_kernel(alphas_ref, x_ref, w1_ref, b1_ref, w2_ref, b2_ref, w3_ref,
                 b3_ref, k1_ref, kb1_ref, k2_ref, kb2_ref, c2_ref):
    a0 = alphas_ref[0]
    a1 = alphas_ref[1]
    a2 = alphas_ref[2]
    a3 = alphas_ref[3]
    a4 = alphas_ref[4]

    def prelu(v, a):
        return jnp.where(v >= 0, v, a * v)

    # ---------------- MLP (batched over B_pad) ----------------
    h = prelu(jnp.dot(x_ref[...], w1_ref[...],
                      preferred_element_type=jnp.float32) + b1_ref[...], a0)
    # TODO(synk): nn.Dropout(0.1) is modeled in eval mode (identity).
    h = prelu(jnp.dot(h, w2_ref[...],
                      preferred_element_type=jnp.float32) + b2_ref[...], a1)
    h = prelu(jnp.dot(h, w3_ref[...],
                      preferred_element_type=jnp.float32) + b3_ref[...], a2)
    # h: (B_pad, L)

    # ---- Conv1d(1 -> C1, k=3, pad=1) as a dense (L, C1*L) operator ----
    c1 = prelu(jnp.dot(h.astype(k1_ref.dtype), k1_ref[...],
                       preferred_element_type=jnp.float32) + kb1_ref[...], a3)
    # ---- Conv1d(C1 -> C2, k=3, pad=1) + channel-major Flatten ----
    c2 = prelu(jnp.dot(c1.astype(k2_ref.dtype), k2_ref[...],
                       preferred_element_type=jnp.float32) + kb2_ref[...], a4)
    # c2: (B_pad, C2*L), lane index == c*L + l (matches PyTorch Flatten order)
    c2_ref[...] = c2.astype(c2_ref.dtype)


# ----------------------------------------------------------------------------
# Kernel 2 (tiled over P): one tile_p-wide slab of the final Linear.
# Pure fw3 HBM stream: (B_pad, CL) @ (CL, tile_p) bf16 -> f32 accumulation.
# ----------------------------------------------------------------------------
def stream_kernel(c2_ref, fw3_ref, fb_ref, out_ref):
    out_ref[...] = jnp.dot(c2_ref[...], fw3_ref[...],
                           preferred_element_type=jnp.float32) + fb_ref[...]


# ----------------------------------------------------------------------------
# Wrapper
# ----------------------------------------------------------------------------
def hypernetwork_flat_forward(x, kp, total_params):
    B = x.shape[0]
    B_pad = _round_up(max(B, 1), 8)          # fill whole sublanes
    CL = kp["k2"].shape[1]                   # C2 * L
    P_pad = kp["fw3"].shape[1]
    tile_p = kp["tile_p"]

    x_pad = jnp.pad(x, ((0, B_pad - B), (0, 0)))

    # ---- one-shot activation chain: c2 = (B_pad, CL), bf16 ----
    chain_vmem = [x_pad, kp["w1"], kp["b1"], kp["w2"], kp["b2"], kp["w3"],
                  kp["b3"], kp["k1"], kp["kb1"], kp["k2"], kp["kb2"]]

    def fullspec(arr):
        return pl.BlockSpec(arr.shape, lambda p, _n=arr.ndim: (0,) * _n)

    c2 = pl.pallas_call(
        chain_kernel,
        out_shape=jax.ShapeDtypeStruct((B_pad, CL), jnp.bfloat16),
        grid_spec=pltpu.PrefetchScalarGridSpec(
            num_scalar_prefetch=0,
            grid=(1,),
            in_specs=([pl.BlockSpec(memory_space=pltpu.MemorySpace.SMEM)]
                      + [fullspec(a) for a in chain_vmem]),
            out_specs=pl.BlockSpec((B_pad, CL), lambda p: (0, 0)),
        ),
    )(kp["alphas"], *chain_vmem)

    # ---- tiled fw3 stream over the padded parameter axis ----
    out = pl.pallas_call(
        stream_kernel,
        out_shape=jax.ShapeDtypeStruct((B_pad, P_pad), jnp.float32),
        grid_spec=pltpu.PrefetchScalarGridSpec(
            num_scalar_prefetch=0,
            grid=(P_pad // tile_p,),
            in_specs=[pl.BlockSpec((B_pad, CL), lambda p: (0, 0)),   # c2 (resident)
                      pl.BlockSpec((CL, tile_p), lambda p: (0, p)),  # fw3 tile
                      pl.BlockSpec((1, tile_p), lambda p: (0, p))],  # fb tile
            out_specs=pl.BlockSpec((B_pad, tile_p), lambda p: (0, p)),
        ),
        compiler_params=pltpu.CompilerParams(
            dimension_semantics=("parallel",)),
    )(c2, kp["fw3"], kp["fb"])

    return out[:B, :total_params]


def reshape_weights(weights_flat, weight_shapes):
    out = {}
    off = 0
    for name, shape in weight_shapes.items():
        size = int(np.prod(shape))
        out[name] = weights_flat[:, off:off + size].reshape((-1,) + tuple(shape))
        off += size
    return out


# ----------------------------------------------------------------------------
# Deterministic parameter init (PyTorch-convention shapes)
# ----------------------------------------------------------------------------
def init_params(key, input_dim, latent_dim, total_params):
    ks = jax.random.split(key, 13)

    def n(k, shape, scale):
        return jax.random.normal(k, shape, jnp.float32) * scale

    return {
        "mlp_w1": n(ks[0], (16, input_dim), 1.0 / np.sqrt(input_dim)),
        "mlp_b1": n(ks[1], (16,), 0.05),
        "mlp_w2": n(ks[2], (32, 16), 1.0 / np.sqrt(16)),
        "mlp_b2": n(ks[3], (32,), 0.05),
        "mlp_w3": n(ks[4], (latent_dim, 32), 1.0 / np.sqrt(32)),
        "mlp_b3": n(ks[5], (latent_dim,), 0.05),
        "cnn_w1": n(ks[6], (C1, 1, 3), 1.0 / np.sqrt(3)),
        "cnn_b1": n(ks[7], (C1,), 0.05),
        "cnn_w2": n(ks[8], (C2, C1, 3), 1.0 / np.sqrt(3 * C1)),
        "cnn_b2": n(ks[9], (C2,), 0.05),
        "fc_w":  n(ks[10], (total_params, C2 * latent_dim),
                   1.0 / np.sqrt(C2 * latent_dim)),
        "fc_b":  n(ks[11], (total_params,), 0.05),
        "alphas": jnp.full((5,), 0.25, jnp.float32),   # PReLU default init
    }


def arrange_params(p, latent_dim, total_params, *, tile_p_cap=1024):
    # tile_p_cap: per-generation knob (~1024 on v5e, 1024-2048 on v6e/v7x).
    L = latent_dim
    P = total_params

    tile_p = min(_round_up(P, 128), tile_p_cap)     # lane-dense output tiles
    P_pad = _round_up(P, tile_p)

    # Shift matrices: conv tap k reads x[l + k - 1] with zero padding.
    S = [jnp.eye(L, k=1, dtype=jnp.float32),
         jnp.eye(L, dtype=jnp.float32),
         jnp.eye(L, k=-1, dtype=jnp.float32)]

    # Conv1d(1->C1) as dense (L, C1*L): K1[a, i*L + b] = sum_k w1[i,0,k]*S[k][a,b]
    k1 = sum(p["cnn_w1"][None, :, 0, k, None] * S[k][:, None, :]
             for k in range(3)).reshape(L, C1 * L)
    kb1 = jnp.repeat(p["cnn_b1"], L)[None, :]                     # (1, C1*L)

    # Conv1d(C1->C2) + channel-major Flatten as dense (C1*L, C2*L):
    #   K2[i*L + a, c*L + b] = sum_k w2[c,i,k]*S[k][a,b]
    k2 = sum(p["cnn_w2"][:, :, k].T[:, None, :, None] * S[k][None, :, None, :]
             for k in range(3)).reshape(C1 * L, C2 * L)
    kb2 = jnp.repeat(p["cnn_b2"], L)[None, :]                     # (1, C2*L)

    # Final Linear: rows of fw3 indexed by c*L + l (PyTorch Flatten order),
    # columns padded to a multiple of tile_p, stored in bf16 for MXU streaming.
    fw3 = jnp.pad(p["fc_w"].T, ((0, 0), (0, P_pad - P))).astype(jnp.bfloat16)
    fb = jnp.pad(p["fc_b"], (0, P_pad - P))[None, :]              # (1, P_pad)

    return {
        "w1": p["mlp_w1"].T, "b1": p["mlp_b1"][None, :],
        "w2": p["mlp_w2"].T, "b2": p["mlp_b2"][None, :],
        "w3": p["mlp_w3"].T, "b3": p["mlp_b3"][None, :],
        # bf16 storage (default MXU precision truncates f32 to bf16 anyway).
        "k1": k1.astype(jnp.bfloat16), "kb1": kb1,
        "k2": k2.astype(jnp.bfloat16), "kb2": kb2,
        "fw3": fw3, "fb": fb,
        "alphas": p["alphas"],        # (5,) f32 -> SMEM
        "tile_p": tile_p,
    }


# ----------------------------------------------------------------------------
# Pure-JAX reference (mirrors the PyTorch forward, eval mode)
# ----------------------------------------------------------------------------
def reference_forward(x, p):
    def prelu(v, a):
        return jnp.where(v >= 0, v, a * v)

    a = p["alphas"]
    h = prelu(x @ p["mlp_w1"].T + p["mlp_b1"], a[0])
    h = prelu(h @ p["mlp_w2"].T + p["mlp_b2"], a[1])
    h = prelu(h @ p["mlp_w3"].T + p["mlp_b3"], a[2])
    xc = h[:, None, :]                                            # (B, 1, L)
    y1 = jax.lax.conv_general_dilated(xc, p["cnn_w1"], (1,), ((1, 1),),
                                      dimension_numbers=("NCH", "OIH", "NCH"))
    y1 = prelu(y1 + p["cnn_b1"][None, :, None], a[3])
    y2 = jax.lax.conv_general_dilated(y1, p["cnn_w2"], (1,), ((1, 1),),
                                      dimension_numbers=("NCH", "OIH", "NCH"))
    y2 = prelu(y2 + p["cnn_b2"][None, :, None], a[4])
    flat = y2.reshape(y2.shape[0], -1)
    return flat @ p["fc_w"].T + p["fc_b"]


if __name__ == "__main__":
    input_dim, latent_dim, batch = 8, 32, 2
    weight_shapes = {
        "conv1.weight": (4, 2, 3, 3),
        "conv1.bias": (4,),
        "fc.weight": (3, 4),
        "fc.bias": (3,),
    }
    total_params = sum(int(np.prod(s)) for s in weight_shapes.values())   # 91

    key = jax.random.PRNGKey(0)
    kx, kparam = jax.random.split(key)
    x = jax.random.normal(kx, (batch, input_dim), jnp.float32)

    params = init_params(kparam, input_dim, latent_dim, total_params)
    kp = arrange_params(params, latent_dim, total_params)

    weights_flat = hypernetwork_flat_forward(x, kp, total_params)
    weights_flat = jax.block_until_ready(weights_flat)

    ref_flat = reference_forward(x, params)
    # c2 and fw3 stream in bf16 (f32 accumulation), conv operators stored in
    # bf16 and matmuls run at default MXU precision -> bf16-level tolerance.
    np.testing.assert_allclose(np.asarray(weights_flat), np.asarray(ref_flat),
                               rtol=2e-2, atol=2e-2)

    weights = reshape_weights(weights_flat, weight_shapes)
    for name, shape in weight_shapes.items():
        assert weights[name].shape == (batch,) + tuple(shape)

    print("KERNEL_OK")
</pallas_src>

<mosaic_0001>
module attributes {stable_mosaic.version = 11 : i64} {
  func.func @chain_kernel(%arg0: i32, %arg1: memref<5xf32, #tpu.memory_space<smem>>, %arg2: memref<8x8xf32, #tpu.memory_space<vmem>>, %arg3: memref<8x16xf32, #tpu.memory_space<vmem>>, %arg4: memref<1x16xf32, #tpu.memory_space<vmem>>, %arg5: memref<16x32xf32, #tpu.memory_space<vmem>>, %arg6: memref<1x32xf32, #tpu.memory_space<vmem>>, %arg7: memref<32x32xf32, #tpu.memory_space<vmem>>, %arg8: memref<1x32xf32, #tpu.memory_space<vmem>>, %arg9: memref<32x512xbf16, #tpu.memory_space<vmem>>, %arg10: memref<1x512xf32, #tpu.memory_space<vmem>>, %arg11: memref<512x1024xbf16, #tpu.memory_space<vmem>>, %arg12: memref<1x1024xf32, #tpu.memory_space<vmem>>, %arg13: memref<8x1024xbf16, #tpu.memory_space<vmem>>) attributes {dimension_semantics = [#tpu.dimension_semantics<arbitrary>], iteration_bounds = array<i64: 1>, scalar_prefetch = 0 : i64, scratch_operands = 0 : i64, tpu.core_type = #tpu.core_type<tc>, window_params = [{transform_indices = @transform_0, window_bounds = array<i64: 5>}, {pipeline_mode = #tpu.pipeline_mode<synchronous>, transform_indices = @transform_1, window_bounds = array<i64: 8, 8>}, {pipeline_mode = #tpu.pipeline_mode<synchronous>, transform_indices = @transform_2, window_bounds = array<i64: 8, 16>}, {pipeline_mode = #tpu.pipeline_mode<synchronous>, transform_indices = @transform_3, window_bounds = array<i64: 1, 16>}, {pipeline_mode = #tpu.pipeline_mode<synchronous>, transform_indices = @transform_4, window_bounds = array<i64: 16, 32>}, {pipeline_mode = #tpu.pipeline_mode<synchronous>, transform_indices = @transform_5, window_bounds = array<i64: 1, 32>}, {pipeline_mode = #tpu.pipeline_mode<synchronous>, transform_indices = @transform_6, window_bounds = array<i64: 32, 32>}, {pipeline_mode = #tpu.pipeline_mode<synchronous>, transform_indices = @transform_7, window_bounds = array<i64: 1, 32>}, {pipeline_mode = #tpu.pipeline_mode<synchronous>, transform_indices = @transform_8, window_bounds = array<i64: 32, 512>}, {pipeline_mode = #tpu.pipeline_mode<synchronous>, transform_indices = @transform_9, window_bounds = array<i64: 1, 512>}, {pipeline_mode = #tpu.pipeline_mode<synchronous>, transform_indices = @transform_10, window_bounds = array<i64: 512, 1024>}, {pipeline_mode = #tpu.pipeline_mode<synchronous>, transform_indices = @transform_11, window_bounds = array<i64: 1, 1024>}, {pipeline_mode = #tpu.pipeline_mode<synchronous>, transform_indices = @transform_12, window_bounds = array<i64: 8, 1024>}]} {
    %c0 = arith.constant 0 : index
    %0 = memref.load %arg1[%c0] : memref<5xf32, #tpu.memory_space<smem>>
    %c1 = arith.constant 1 : index
    %1 = memref.load %arg1[%c1] : memref<5xf32, #tpu.memory_space<smem>>
    %c2 = arith.constant 2 : index
    %2 = memref.load %arg1[%c2] : memref<5xf32, #tpu.memory_space<smem>>
    %c3 = arith.constant 3 : index
    %3 = memref.load %arg1[%c3] : memref<5xf32, #tpu.memory_space<smem>>
    %c4 = arith.constant 4 : index
    %4 = memref.load %arg1[%c4] : memref<5xf32, #tpu.memory_space<smem>>
    %c0_0 = arith.constant 0 : index
    %c0_1 = arith.constant 0 : index
    %5 = vector.load %arg2[%c0_0, %c0_1] : memref<8x8xf32, #tpu.memory_space<vmem>>, vector<8x8xf32>
    %c0_2 = arith.constant 0 : index
    %c0_3 = arith.constant 0 : index
    %6 = vector.load %arg3[%c0_2, %c0_3] : memref<8x16xf32, #tpu.memory_space<vmem>>, vector<8x16xf32>
    %cst = arith.constant dense<0.000000e+00> : vector<8x16xf32>
    %7 = tpu.matmul %5, %6, %cst {dimension_numbers = #tpu.dot_dimension_numbers<[1], [0], [0], [1], [0, 0, 1, 1], [], []>} : vector<8x8xf32>, vector<8x16xf32>, vector<8x16xf32> -> vector<8x16xf32>
    %c0_4 = arith.constant 0 : index
    %c0_5 = arith.constant 0 : index
    %8 = vector.load %arg4[%c0_4, %c0_5] : memref<1x16xf32, #tpu.memory_space<vmem>>, vector<1x16xf32>
    %9 = vector.broadcast %8 : vector<1x16xf32> to vector<8x16xf32>
    %10 = arith.addf %7, %9 : vector<8x16xf32>
    %cst_6 = arith.constant 0.000000e+00 : f32
    %11 = vector.broadcast %cst_6 : f32 to vector<8x16xf32>
    %12 = arith.cmpf oge, %10, %11 : vector<8x16xf32>
    %13 = vector.broadcast %0 : f32 to vector<8x16xf32>
    %14 = arith.mulf %13, %10 : vector<8x16xf32>
    %15 = arith.select %12, %10, %14 : vector<8x16xi1>, vector<8x16xf32>
    %c0_7 = arith.constant 0 : index
    %c0_8 = arith.constant 0 : index
    %16 = vector.load %arg5[%c0_7, %c0_8] : memref<16x32xf32, #tpu.memory_space<vmem>>, vector<16x32xf32>
    %cst_9 = arith.constant dense<0.000000e+00> : vector<8x32xf32>
    %17 = tpu.matmul %15, %16, %cst_9 {dimension_numbers = #tpu.dot_dimension_numbers<[1], [0], [0], [1], [0, 0, 1, 1], [], []>} : vector<8x16xf32>, vector<16x32xf32>, vector<8x32xf32> -> vector<8x32xf32>
    %c0_10 = arith.constant 0 : index
    %c0_11 = arith.constant 0 : index
    %18 = vector.load %arg6[%c0_10, %c0_11] : memref<1x32xf32, #tpu.memory_space<vmem>>, vector<1x32xf32>
    %19 = vector.broadcast %18 : vector<1x32xf32> to vector<8x32xf32>
    %20 = arith.addf %17, %19 : vector<8x32xf32>
    %cst_12 = arith.constant 0.000000e+00 : f32
    %21 = vector.broadcast %cst_12 : f32 to vector<8x32xf32>
    %22 = arith.cmpf oge, %20, %21 : vector<8x32xf32>
    %23 = vector.broadcast %1 : f32 to vector<8x32xf32>
    %24 = arith.mulf %23, %20 : vector<8x32xf32>
    %25 = arith.select %22, %20, %24 : vector<8x32xi1>, vector<8x32xf32>
    %c0_13 = arith.constant 0 : index
    %c0_14 = arith.constant 0 : index
    %26 = vector.load %arg7[%c0_13, %c0_14] : memref<32x32xf32, #tpu.memory_space<vmem>>, vector<32x32xf32>
    %cst_15 = arith.constant dense<0.000000e+00> : vector<8x32xf32>
    %27 = tpu.matmul %25, %26, %cst_15 {dimension_numbers = #tpu.dot_dimension_numbers<[1], [0], [0], [1], [0, 0, 1, 1], [], []>} : vector<8x32xf32>, vector<32x32xf32>, vector<8x32xf32> -> vector<8x32xf32>
    %c0_16 = arith.constant 0 : index
    %c0_17 = arith.constant 0 : index
    %28 = vector.load %arg8[%c0_16, %c0_17] : memref<1x32xf32, #tpu.memory_space<vmem>>, vector<1x32xf32>
    %29 = vector.broadcast %28 : vector<1x32xf32> to vector<8x32xf32>
    %30 = arith.addf %27, %29 : vector<8x32xf32>
    %cst_18 = arith.constant 0.000000e+00 : f32
    %31 = vector.broadcast %cst_18 : f32 to vector<8x32xf32>
    %32 = arith.cmpf oge, %30, %31 : vector<8x32xf32>
    %33 = vector.broadcast %2 : f32 to vector<8x32xf32>
    %34 = arith.mulf %33, %30 : vector<8x32xf32>
    %35 = arith.select %32, %30, %34 : vector<8x32xi1>, vector<8x32xf32>
    %36 = arith.truncf %35 : vector<8x32xf32> to vector<8x32xbf16>
    %c0_19 = arith.constant 0 : index
    %c0_20 = arith.constant 0 : index
    %37 = vector.load %arg9[%c0_19, %c0_20] : memref<32x512xbf16, #tpu.memory_space<vmem>>, vector<32x512xbf16>
    %cst_21 = arith.constant dense<0.000000e+00> : vector<8x512xf32>
    %38 = tpu.matmul %36, %37, %cst_21 {dimension_numbers = #tpu.dot_dimension_numbers<[1], [0], [0], [1], [0, 0, 1, 1], [], []>} : vector<8x32xbf16>, vector<32x512xbf16>, vector<8x512xf32> -> vector<8x512xf32>
    %c0_22 = arith.constant 0 : index
    %c0_23 = arith.constant 0 : index
    %39 = vector.load %arg10[%c0_22, %c0_23] : memref<1x512xf32, #tpu.memory_space<vmem>>, vector<1x512xf32>
    %40 = vector.broadcast %39 : vector<1x512xf32> to vector<8x512xf32>
    %41 = arith.addf %38, %40 : vector<8x512xf32>
    %cst_24 = arith.constant 0.000000e+00 : f32
    %42 = vector.broadcast %cst_24 : f32 to vector<8x512xf32>
    %43 = arith.cmpf oge, %41, %42 : vector<8x512xf32>
    %44 = vector.broadcast %3 : f32 to vector<8x512xf32>
    %45 = arith.mulf %44, %41 : vector<8x512xf32>
    %46 = arith.select %43, %41, %45 : vector<8x512xi1>, vector<8x512xf32>
    %47 = arith.truncf %46 : vector<8x512xf32> to vector<8x512xbf16>
    %c0_25 = arith.constant 0 : index
    %c0_26 = arith.constant 0 : index
    %48 = vector.load %arg11[%c0_25, %c0_26] : memref<512x1024xbf16, #tpu.memory_space<vmem>>, vector<512x1024xbf16>
    %cst_27 = arith.constant dense<0.000000e+00> : vector<8x1024xf32>
    %49 = tpu.matmul %47, %48, %cst_27 {dimension_numbers = #tpu.dot_dimension_numbers<[1], [0], [0], [1], [0, 0, 1, 1], [], []>} : vector<8x512xbf16>, vector<512x1024xbf16>, vector<8x1024xf32> -> vector<8x1024xf32>
    %c0_28 = arith.constant 0 : index
    %c0_29 = arith.constant 0 : index
    %50 = vector.load %arg12[%c0_28, %c0_29] : memref<1x1024xf32, #tpu.memory_space<vmem>>, vector<1x1024xf32>
    %51 = vector.broadcast %50 : vector<1x1024xf32> to vector<8x1024xf32>
    %52 = arith.addf %49, %51 : vector<8x1024xf32>
    %cst_30 = arith.constant 0.000000e+00 : f32
    %53 = vector.broadcast %cst_30 : f32 to vector<8x1024xf32>
    %54 = arith.cmpf oge, %52, %53 : vector<8x1024xf32>
    %55 = vector.broadcast %4 : f32 to vector<8x1024xf32>
    %56 = arith.mulf %55, %52 : vector<8x1024xf32>
    %57 = arith.select %54, %52, %56 : vector<8x1024xi1>, vector<8x1024xf32>
    %58 = arith.truncf %57 : vector<8x1024xf32> to vector<8x1024xbf16>
    %c0_31 = arith.constant 0 : index
    %c0_32 = arith.constant 0 : index
    %59 = vector.load %arg13[%c0_31, %c0_32] : memref<8x1024xbf16, #tpu.memory_space<vmem>>, vector<8x1024xbf16>
    tpu.vector_store %arg13[%c0_31, %c0_32], %58 {strides = array<i32>} : memref<8x1024xbf16, #tpu.memory_space<vmem>>, vector<8x1024xbf16>,
    return
  }
  func.func @transform_0(%arg0: i32) -> i32 {
    %c0_i32 = arith.constant 0 : i32
    %c0_i32_0 = arith.constant 0 : i32
    return %c0_i32 : i32
  }
  func.func @transform_1(%arg0: i32) -> (i32, i32) {
    %c0_i32 = arith.constant 0 : i32
    %c0_i32_0 = arith.constant 0 : i32
    %c0_i32_1 = arith.constant 0 : i32
    return %c0_i32, %c0_i32_0 : i32, i32
  }
  func.func @transform_2(%arg0: i32) -> (i32, i32) {
    %c0_i32 = arith.constant 0 : i32
    %c0_i32_0 = arith.constant 0 : i32
    %c0_i32_1 = arith.constant 0 : i32
    return %c0_i32, %c0_i32_0 : i32, i32
  }
  func.func @transform_3(%arg0: i32) -> (i32, i32) {
    %c0_i32 = arith.constant 0 : i32
    %c0_i32_0 = arith.constant 0 : i32
    %c0_i32_1 = arith.constant 0 : i32
    return %c0_i32, %c0_i32_0 : i32, i32
  }
  func.func @transform_4(%arg0: i32) -> (i32, i32) {
    %c0_i32 = arith.constant 0 : i32
    %c0_i32_0 = arith.constant 0 : i32
    %c0_i32_1 = arith.constant 0 : i32
    return %c0_i32, %c0_i32_0 : i32, i32
  }
  func.func @transform_5(%arg0: i32) -> (i32, i32) {
    %c0_i32 = arith.constant 0 : i32
    %c0_i32_0 = arith.constant 0 : i32
    %c0_i32_1 = arith.constant 0 : i32
    return %c0_i32, %c0_i32_0 : i32, i32
  }
  func.func @transform_6(%arg0: i32) -> (i32, i32) {
    %c0_i32 = arith.constant 0 : i32
    %c0_i32_0 = arith.constant 0 : i32
    %c0_i32_1 = arith.constant 0 : i32
    return %c0_i32, %c0_i32_0 : i32, i32
  }
  func.func @transform_7(%arg0: i32) -> (i32, i32) {
    %c0_i32 = arith.constant 0 : i32
    %c0_i32_0 = arith.constant 0 : i32
    %c0_i32_1 = arith.constant 0 : i32
    return %c0_i32, %c0_i32_0 : i32, i32
  }
  func.func @transform_8(%arg0: i32) -> (i32, i32) {
    %c0_i32 = arith.constant 0 : i32
    %c0_i32_0 = arith.constant 0 : i32
    %c0_i32_1 = arith.constant 0 : i32
    return %c0_i32, %c0_i32_0 : i32, i32
  }
  func.func @transform_9(%arg0: i32) -> (i32, i32) {
    %c0_i32 = arith.constant 0 : i32
    %c0_i32_0 = arith.constant 0 : i32
    %c0_i32_1 = arith.constant 0 : i32
    return %c0_i32, %c0_i32_0 : i32, i32
  }
  func.func @transform_10(%arg0: i32) -> (i32, i32) {
    %c0_i32 = arith.constant 0 : i32
    %c0_i32_0 = arith.constant 0 : i32
    %c0_i32_1 = arith.constant 0 : i32
    return %c0_i32, %c0_i32_0 : i32, i32
  }
  func.func @transform_11(%arg0: i32) -> (i32, i32) {
    %c0_i32 = arith.constant 0 : i32
    %c0_i32_0 = arith.constant 0 : i32
    %c0_i32_1 = arith.constant 0 : i32
    return %c0_i32, %c0_i32_0 : i32, i32
  }
  func.func @transform_12(%arg0: i32) -> (i32, i32) {
    %c0_i32 = arith.constant 0 : i32
    %c0_i32_0 = arith.constant 0 : i32
    %c0_i32_1 = arith.constant 0 : i32
    return %c0_i32, %c0_i32_0 : i32, i32
  }
}

</mosaic_0001>

<bundles_post_ra>
// kernel: tpu_custom_call.1
= control target key start
LH: loop header
LB: loop body
LE: loop exit
PB: predicated region body
PF: predicated region fallthrough
CT: control target
= control target key end

     0   :  { %17 = vsyncpa [#allocation5], 0  ;;  %s3275_s0 = inlined_call_operand.hbm [shape: f32[5], index: 0, kind: input, shape index: {}]   ;;  %s3276_s1 = inlined_call_operand.hbm [shape: f32[8,8], index: 1, kind: input, shape index: {}]   ;;  %s3277_s2 = inlined_call_operand.hbm [shape: f32[8,16], index: 2, kind: input, shape index: {}]   ;;  %s3278_s3 = inlined_call_operand.vmem [shape: f32[1,16], index: 3, kind: input, shape index: {}]   ;;  %s3279_s4 = inlined_call_operand.hbm [shape: f32[16,32], index: 4, kind: input, shape index: {}]   ;;  %s3280_s5 = inlined_call_operand.vmem [shape: f32[1,32], index: 5, kind: input, shape index: {}]   ;;  %s3281_s6 = inlined_call_operand.hbm [shape: f32[32,32], index: 6, kind: input, shape index: {}]   ;;  %s3282_s7 = inlined_call_operand.vmem [shape: f32[1,32], index: 7, kind: input, shape index: {}]   ;;  %s3283_s8 = inlined_call_operand.hbm [shape: bf16[32,512], index: 8, kind: input, shape index: {}]   ;;  %s3284_s9 = inlined_call_operand.vmem [shape: f32[1,512], index: 9, kind: input, shape index: {}]   ;;  %s3285_s10 = inlined_call_operand.hbm [shape: bf16[512,1024], index: 10, kind: input, shape index: {}]   ;;  %s3286_s11 = inlined_call_operand.vmem [shape: f32[1,1024], index: 11, kind: input, shape index: {}]   ;;  %s3287_s12 = inlined_call_operand.hbm [shape: bf16[8,1024], index: 12, kind: output, shape index: {}]  }
   0x1   :  { %18 = vsyncpa [#allocation3], 0 }
   0x2   :  { %19 = vsyncpa [#allocation8], 0 }
   0x3   :  { %20 = vsyncpa [#allocation11], 0 }
   0x4   :  { %21 = vsyncpa [#allocation14], 0 }
   0x5   :  { %22 = vsyncpa [#allocation4], 0  ;;  %s3065_s21 = smov [#allocation7]  }
   0x6   :  { %s47_s22 = sshll.u32 %s3065_s21, 4  ;;  %s48_s22 = int_to_ptr.vmem [resolvable:$true] %s47_s22 }
   0x7   :  { %s2913_s23 = scalar_lea.vmem %s48_s22, 128  ;;  %p2918_p1 = scmp.lt.s32.totalorder %s48_s22, %s48_s22 }
   0x8   :  { %p2914_p0 = scmp.ne.s32.totalorder %s48_s22, %s2913_s23  ;;  %p2919_p2 = scmp.lt.s32.totalorder %s2913_s23, %s2913_s23 }
   0xa   :  { %p2920_p3 = por %p2919_p2, %p2918_p1 }
   0xc   :  { %p2921_p4 = pnand %p2920_p3, %p2914_p0 }
   0xe   :  { %2924 = shalt.err (!%p2921_p4)
}
   0xf   :  { %50 = dma.hbm_to_vmem [thread:$0]  %s3277_s2, 128, %s48_s22, [#allocation8]  }
  0x10   :  { %s3066_s26 = smov [#allocation10]  }
  0x11   :  { %s72_s27 = sshll.u32 %s3066_s26, 4  ;;  %s73_s27 = int_to_ptr.vmem [resolvable:$true] %s72_s27 }
  0x12   :  { %s2933_s28 = scalar_lea.vmem %s73_s27, 512  ;;  %p2938_p6 = scmp.lt.s32.totalorder %s73_s27, %s73_s27 }
  0x13   :  { %p2934_p5 = scmp.ne.s32.totalorder %s73_s27, %s2933_s28  ;;  %p2939_p7 = scmp.lt.s32.totalorder %s2933_s28, %s2933_s28 }
  0x15   :  { %p2940_p8 = por %p2939_p7, %p2938_p6 }
  0x17   :  { %p2941_p9 = pnand %p2940_p8, %p2934_p5 }
  0x19   :  { %2944 = shalt.err (!%p2941_p9)
}
  0x1a   :  { %s3067_s29 = smov 128   ;;  %s3068_s30 = smov 8  }
  0x1b   :  { %78 = dma.hbm_to_vmem [thread:$0]  %s3281_s6, 512, %s73_s27, [#allocation11], %s3067_s29, %s3067_s29, %s3068_s30  }
  0x1c   :  { %s3069_s15 = smov [#allocation2]   ;;  %s3070_s2 = smov [#allocation6]  }
  0x1d   :  { %30 = dma.hbm_to_smem %s3275_s0, 16, %s3069_s15, [#allocation5]  }
  0x1e   :  { %s37_s18 = sshll.u32 %s3070_s2, 4  ;;  %s3071_s19 = smov [#allocation9]   ;;  %s38_s18 = int_to_ptr.vmem [resolvable:$true] %s37_s18 }
  0x1f   :  { %s58_s20 = sshll.u32 %s3071_s19, 4  ;;  %s2961_s21 = scalar_lea.vmem %s38_s18, 128  ;;  %s59_s20 = int_to_ptr.vmem [resolvable:$true] %s58_s20 }
  0x20   :  { %p2962_p10 = scmp.ne.s32.totalorder %s38_s18, %s2961_s21  ;;  %p2966_p11 = scmp.lt.s32.totalorder %s38_s18, %s38_s18 }
  0x21   :  { %p2967_p12 = scmp.lt.s32.totalorder %s2961_s21, %s2961_s21 }
  0x23   :  { %p2968_p13 = por %p2967_p12, %p2966_p11 }
  0x25   :  { %p2969_p0 = pnand %p2968_p13, %p2962_p10 }
  0x27   :  { %2972 = shalt.err (!%p2969_p0)
}
  0x28   :  { %40 = dma.hbm_to_vmem [thread:$0]  %s3276_s1, 128, %s38_s18, [#allocation3]  }
  0x29   :  { %s2981_s6 = scalar_lea.vmem %s59_s20, 256  ;;  %p2986_p2 = scmp.lt.s32.totalorder %s59_s20, %s59_s20 }
  0x2a   :  { %p2982_p1 = scmp.ne.s32.totalorder %s59_s20, %s2981_s6  ;;  %p2987_p3 = scmp.lt.s32.totalorder %s2981_s6, %s2981_s6 }
  0x2c   :  { %p2988_p4 = por %p2987_p3, %p2986_p2 }
  0x2e   :  { %p2989_p5 = pnand %p2988_p4, %p2982_p1 }
  0x30   :  { %2992 = shalt.err (!%p2989_p5)
}
  0x31   :  { %64 = dma.hbm_to_vmem [thread:$0]  %s3279_s4, 256, %s59_s20, [#allocation8], %s3067_s29, %s3067_s29, %s3068_s30  }
  0x32   :  { %s3072_s25 = smov [#allocation12]  }
  0x33   :  { %s86_s26 = sshll.u32 %s3072_s25, 4  ;;  %s87_s26 = int_to_ptr.vmem [resolvable:$true] %s86_s26 }
  0x34   :  { %s3001_s27 = scalar_lea.vmem %s87_s26, 1024  ;;  %p3006_p7 = scmp.lt.s32.totalorder %s87_s26, %s87_s26 }
  0x35   :  { %p3002_p6 = scmp.ne.s32.totalorder %s87_s26, %s3001_s27  ;;  %p3007_p8 = scmp.lt.s32.totalorder %s3001_s27, %s3001_s27 }
  0x37   :  { %p3008_p9 = por %p3007_p8, %p3006_p7 }
  0x39   :  { %p3009_p10 = pnand %p3008_p9, %p3002_p6 }
  0x3b   :  { %3012 = shalt.err (!%p3009_p10)
}
  0x3c   :  { %s3073_s1 = smov 256   ;;  %s3074_s28 = smov 16  }
  0x3d   :  { %92 = dma.hbm_to_vmem [thread:$0]  %s3283_s8, 1024, %s87_s26, [#allocation11], %s3073_s1, %s3073_s1, %s3074_s28  }
  0x3e   :  { %s3075_s15 = smov [#allocation13]  }
  0x3f   :  { %s100_s16 = sshll.u32 %s3075_s15, 4  ;;  %s101_s16 = int_to_ptr.vmem [resolvable:$true] %s100_s16 }
  0x40   :  { %s3021_s4 = scalar_lea.vmem %s101_s16, 32768  ;;  %p3026_p12 = scmp.lt.s32.totalorder %s101_s16, %s101_s16 }
  0x41   :  { %p3022_p11 = scmp.ne.s32.totalorder %s101_s16, %s3021_s4  ;;  %p3027_p13 = scmp.lt.s32.totalorder %s3021_s4, %s3021_s4 }
  0x43   :  { %p3028_p0 = por %p3027_p13, %p3026_p12 }
  0x45   :  { %p3029_p1 = pnand %p3028_p0, %p3022_p11 }
  0x47   :  { %3032 = shalt.err (!%p3029_p1)
}
  0x48   :  { %s3076_s29 = smov 512   ;;  %s3077_s30 = smov 32  }
  0x49   :  { %106 = dma.hbm_to_vmem [thread:$0]  %s3285_s10, 32768, %s101_s16, [#allocation14], %s3076_s29, %s3076_s29, %s3077_s30  }
  0x4a   :  { %3053 = dma.done.wait [#allocation5], 16  }
  0x4b   :  { %3054 = vsyncadd [#allocation5], 4294967280 }
  0x4c   :  { %3055 = dma.done.wait [#allocation3], 128  }
  0x4d   :  { %3056 = vsyncadd [#allocation3], 4294967168 }
  0x4e   :  { %3057 = dma.done.wait [#allocation8], 384  }
  0x4f   :  { %3058 = vsyncadd [#allocation8], 4294966912 }
  0x50   :  { %3059 = dma.done.wait [#allocation11], 1536  }
  0x51   :  { %3060 = vsyncadd [#allocation11], 4294965760 }
  0x52   :  { %3061 = dma.done.wait [#allocation14], 32768  }
  0x53   :  { %3062 = vsyncadd [#allocation14], 4294934528 }
  0x54   :  { %130 = sfence }
  0x55   :  { %v138_v0 = vld [vmem:[#allocation7] sm:$0xff]  ;;  %v137_v1 = vld [vmem:[#allocation6] sm:$0xff]  ;;  %vm146_vm0 = vcmask 64512   ;;  %v3078_v2 = vmov 0.0   ;;  %vm3079_vm1 = vmmov 0   ;;  %v225_v3 = vld [vmem:[#allocation9 + $0x8] sm:$0xff] }
  0x56   :  { %2853 = vmatprep.subr.mxu1 %v3078_v2  ;;  %2855 = vmatprep.mubr.msk.f32.mxu1 %vm3079_vm1, %v3078_v2  ;;  %v224_v4 = vld [vmem:[#allocation9] sm:$0xff]  ;;  %v314_v5 = vld [vmem:[#allocation10 + $0x18] sm:$0xff]  ;;  %s132_s8 = sld [smem:[#allocation2]]  ;;  %v2563_v6 = vld [vmem:[%s3278_s3] ss:$0 sm:$0xff]  ;;  %vm233_vm3 = vcmask 130048  }
  0x57   :  { %2854 = vmatpush3.msra.mxu1 %v138_v0  ;;  %2865 = vmatprep.subr.mxu0 %v3078_v2  ;;  %v313_v13 = vld [vmem:[#allocation10 + $0x10] sm:$0xff]  ;;  %v312_v14 = vld [vmem:[#allocation10 + $0x8] sm:$0xff]  ;;  %v311_v15 = vld [vmem:[#allocation10] sm:$0xff]  ;;  %s2559_s19 = sld [smem:[#allocation2 + $0x1]]  ;;  %vm322_vm5 = vcmask 261120   ;;  %v3080_v31 = vmov 0  }
  0x58   :  { %2856 = vmatmul.mubr.msk.f32.vlgmr.msra.gmra.mxu1 %vm146_vm0, %v137_v1  ;;  %2858 = vmatprep.subr.mxu1 %v3078_v2  ;;  %v2565_v16 = vld [vmem:[%s3280_s5] ss:$0 sm:$0xff]  ;;  %v2895_v23 = vld [vmem:[#allocation12 + $0x24] ss:$16 sps:$4 sm:$0xff]   ;;  %v2898_v24 = vld [vmem:[#allocation12 + $0x2c] ss:$16 sps:$4 sm:$0xff]  }
  0x59   :  { %2862 = vmatprep.mubr.msk.f32.mxu1 %vm3079_vm1, %v3078_v2  ;;  %2873 = vmatprep.mubr.msk.f32.mxu0 %vm3079_vm1, %v3078_v2  ;;  %v2893_v25 = vld [vmem:[#allocation12 + $0x20] ss:$16 sps:$4 sm:$0xff]   ;;  %v2896_v26 = vld [vmem:[#allocation12 + $0x28] ss:$16 sps:$4 sm:$0xff]   ;;  %v2901_v27 = vld [vmem:[#allocation12 + $0x4] ss:$16 sps:$4 sm:$0xff]  }
  0x5a   :  { %2859 = vmatpush3.msra.mxu1 %v225_v3  ;;  %2866 = vmatpush3.msra.mxu0 %v314_v5  ;;  %v2904_v28 = vld [vmem:[#allocation12 + $0xc] ss:$16 sps:$4 sm:$0xff]   ;;  %v2899_v29 = vld [vmem:[#allocation12] ss:$16 sps:$4 sm:$0xff]   ;;  %v2902_v30 = vld [vmem:[#allocation12 + $0x8] ss:$16 sps:$4 sm:$0xff]  }
  0x5b   :  { %2860 = vmatprep.subr.mxu1 %v3078_v2  ;;  %2867 = vmatprep.subr.mxu0 %v3078_v2  ;;  %v629_v32 = vld [vmem:[#allocation13 + $0x1c0] sm:$0xff]  ;;  %s2560_s5 = sld [smem:[#allocation2 + $0x2]] }
  0x5c   :  { %2861 = vmatpush3.msra.mxu1 %v224_v4  ;;  %v221_v8 = vstv %s132_s8  ;;  %2868 = vmatpush3.msra.mxu0 %v313_v13  ;;  %v633_v33 = vld [vmem:[#allocation13 + $0x1e0] sm:$0xff]  ;;  %s2562_s24 = sld [smem:[#allocation2 + $0x4]] }
  0x5d   :  { %2869 = vmatprep.subr.mxu0 %v3078_v2  ;;  %v308_v18 = vstv %s2559_s19  ;;  %486 = vmatprep.subr.bf16.mxu1 %v2895_v23  ;;  %v757_v34 = vld [vmem:[#allocation13 + $0x5c0] sm:$0xff]  ;;  %v2635_v35 = vcombine.low %v629_v32, %v633_v33  ;;  %v2636_v36 = vcombine.high %v629_v32, %v633_v33 }
  0x5e   :  { %2870 = vmatpush3.msra.mxu0 %v312_v14  ;;  %v761_v37 = vld [vmem:[#allocation13 + $0x5e0] sm:$0xff] }
  0x5f   :  { %2871 = vmatprep.subr.mxu0 %v3078_v2  ;;  %v2763_v38 = vcombine.low %v757_v34, %v761_v37  ;;  %v2764_v39 = vcombine.high %v757_v34, %v761_v37  ;;  %v2567_v40 = vld [vmem:[%s3282_s7] ss:$0 sm:$0xff]  ;;  %s2561_s7 = sld [smem:[#allocation2 + $0x3]] }
  0x60   :  { %2872 = vmatpush3.msra.mxu0 %v311_v15  ;;  %v621_v45 = vld [vmem:[#allocation13 + $0x180] sm:$0xff] }
  0x61   :  { %527 = vmatprep.subr.bf16.mxu0 %v2898_v24  ;;  %v397_v42 = vstv %s2560_s5  ;;  %v625_v47 = vld [vmem:[#allocation13 + $0x1a0] sm:$0xff] }
  0x62   :  { %v749_v48 = vld [vmem:[#allocation13 + $0x580] sm:$0xff]  ;;  %v2628_v52 = vcombine.high %v621_v45, %v625_v47  ;;  %v2627_v58 = vcombine.low %v621_v45, %v625_v47 }
  0x63   :  { %v753_v49 = vld [vmem:[#allocation13 + $0x5a0] sm:$0xff] }
  0x64   :  { %v2756_v53 = vcombine.high %v749_v48, %v753_v49  ;;  %v613_v54 = vld [vmem:[#allocation13 + $0x140] sm:$0xff]  ;;  %v2755_v59 = vcombine.low %v749_v48, %v753_v49 }
  0x65   :  { %v617_v55 = vld [vmem:[#allocation13 + $0x160] sm:$0xff] }
  0x66   :  { %v741_v56 = vld [vmem:[#allocation13 + $0x540] sm:$0xff]  ;;  %v2620_v60 = vcombine.high %v613_v54, %v617_v55  ;;  %v2619_v2 = vcombine.low %v613_v54, %v617_v55 }
  0x67   :  { %v745_v57 = vld [vmem:[#allocation13 + $0x560] sm:$0xff] }
  0x68   :  { %v2748_v61 = vcombine.high %v741_v56, %v745_v57  ;;  %v605_v62 = vld [vmem:[#allocation13 + $0x100] sm:$0xff]  ;;  %v2747_v3 = vcombine.low %v741_v56, %v745_v57 }
  0x69   :  { %v609_v63 = vld [vmem:[#allocation13 + $0x120] sm:$0xff] }
  0x6a   :  { %v733_v0 = vld [vmem:[#allocation13 + $0x500] sm:$0xff]  ;;  %v2612_v4 = vcombine.high %v605_v62, %v609_v63 }
  0x6b   :  { %v737_v1 = vld [vmem:[#allocation13 + $0x520] sm:$0xff] }
  0x6c   :  { %v2740_v5 = vcombine.high %v733_v0, %v737_v1  ;;  %v589_v14 = vld [vmem:[#allocation13 + $0x80] sm:$0xff] }
  0x6d   :  { %v593_v15 = vld [vmem:[#allocation13 + $0xa0] sm:$0xff] }
  0x6e   :  { %v585_v23 = vld [vmem:[#allocation13 + $0x60] sm:$0xff] }
  0x6f   :  { %v709_v24 = vld [vmem:[#allocation13 + $0x440] sm:$0xff] }
  0x70   :  { %v701_v32 = vld [vmem:[#allocation13 + $0x400] sm:$0xff] }
  0x71   :  { %v705_v33 = vld [vmem:[#allocation13 + $0x420] sm:$0xff] }
  0x72   :  { %v2708_v37 = vcombine.high %v701_v32, %v705_v33  ;;  %v689_v47 = vld [vmem:[#allocation13 + $0x3a0] sm:$0xff] }
  0x73   :  { %v813_v48 = vld [vmem:[#allocation13 + $0x780] sm:$0xff] }
  0x74   :  { %v817_v49 = vld [vmem:[#allocation13 + $0x7a0] sm:$0xff] }
  0x75   :  { %v677_v54 = vld [vmem:[#allocation13 + $0x340] sm:$0xff] }
  0x76   :  { %v681_v55 = vld [vmem:[#allocation13 + $0x360] sm:$0xff] }
  0x77   :  { %v805_v56 = vld [vmem:[#allocation13 + $0x740] sm:$0xff] }
  0x78   :  { %v809_v57 = vld [vmem:[#allocation13 + $0x760] sm:$0xff] }
 0x118   :  { %v216_v7 = vpop.f32.mrf.mxu1 }
 0x119   :  { %v217_v9 = vadd.f32 %v2563_v6, %v216_v7  ;;  %v597_v6 = vld [vmem:[#allocation13 + $0xc0] sm:$0xff] }
 0x11a   :  { %v2857_v10 = vpop.f32.mrf.mxu1  ;;  %v601_v7 = vld [vmem:[#allocation13 + $0xe0] sm:$0xff] }
 0x11b   :  { %vm220_vm2 = vcmp.ge.f32.partialorder %v217_v9, 0.0  ;;  %v222_v11 = vmul.f32 %v221_v8, %v217_v9  ;;  %v725_v8 = vld [vmem:[#allocation13 + $0x4c0] sm:$0xff]  ;;  %v2611_v10 = vcombine.low %v605_v62, %v609_v63 }
 0x11c   :  { %v669_v62 = vld [vmem:[#allocation13 + $0x300] sm:$0xff] }
 0x11d   :  { %v223_v12 = vsel %vm220_vm2, %v217_v9, %v222_v11  ;;  %v729_v9 = vld [vmem:[#allocation13 + $0x4e0] sm:$0xff]  ;;  %v2739_v11 = vcombine.low %v733_v0, %v737_v1 }
 0x11e   :  { %2863 = vmatmul.mubr.msk.f32.vlgmr.msra.gmra.mxu1 %vm233_vm3, %v223_v12  ;;  %v2604_v12 = vcombine.high %v597_v6, %v601_v7  ;;  %v2732_v13 = vcombine.high %v725_v8, %v729_v9  ;;  %v673_v63 = vld [vmem:[#allocation13 + $0x320] sm:$0xff] }
 0x11f   :  { %487 = vmatpush1.bf16.msra.mxu1 %v2893_v25  ;;  %506 = vmatprep.mubr.bf16.mxu1 %v3080_v31  ;;  %v713_v25 = vld [vmem:[#allocation13 + $0x460] sm:$0xff] }
 0x120   :  { %488 = vmatprep.subr.bf16.mxu1 %v2901_v27  ;;  %v797_v0 = vld [vmem:[#allocation13 + $0x700] sm:$0xff] }
 0x121   :  { %v801_v1 = vld [vmem:[#allocation13 + $0x720] sm:$0xff] }
 0x123   :  { %489 = vmatpush1.bf16.msra.mxu1 %v2899_v29  ;;  %v2716_v29 = vcombine.high %v709_v24, %v713_v25 }
 0x124   :  { %2151 = vmatprep.subr.bf16.mxu1 %v2636_v36 }
 0x1de   :  { %v303_v17 = vpop.f32.mrf.mxu1 }
 0x1df   :  { %v304_v19 = vadd.f32 %v2565_v16, %v303_v17  ;;  %v717_v16 = vld [vmem:[#allocation13 + $0x480] sm:$0xff] }
 0x1e0   :  { %v2864_v20 = vpop.f32.mrf.mxu1  ;;  %v721_v17 = vld [vmem:[#allocation13 + $0x4a0] sm:$0xff] }
 0x1e1   :  { %vm307_vm4 = vcmp.ge.f32.partialorder %v304_v19, 0.0  ;;  %v309_v21 = vmul.f32 %v308_v18, %v304_v19  ;;  %v2603_v18 = vcombine.low %v597_v6, %v601_v7  ;;  %v2596_v20 = vcombine.high %v589_v14, %v593_v15  ;;  %v661_v6 = vld [vmem:[#allocation13 + $0x2c0] sm:$0xff] }
 0x1e2   :  { %v2723_v27 = vcombine.low %v717_v16, %v721_v17  ;;  %v665_v7 = vld [vmem:[#allocation13 + $0x2e0] sm:$0xff] }
 0x1e3   :  { %v310_v22 = vsel %vm307_vm4, %v304_v19, %v309_v21  ;;  %v2731_v19 = vcombine.low %v725_v8, %v729_v9  ;;  %v2724_v21 = vcombine.high %v717_v16, %v721_v17  ;;  %v789_v8 = vld [vmem:[#allocation13 + $0x6c0] sm:$0xff] }
 0x1e4   :  { %2874 = vmatmul.mubr.msk.f32.vlgmr.msra.gmra.mxu0 %vm322_vm5, %v310_v22  ;;  %v581_v22 = vld [vmem:[#allocation13 + $0x40] sm:$0xff] }
 0x1e5   :  { %528 = vmatpush1.bf16.msra.mxu0 %v2896_v26  ;;  %547 = vmatprep.mubr.bf16.mxu0 %v3080_v31  ;;  %v2595_v26 = vcombine.low %v589_v14, %v593_v15  ;;  %v577_v31 = vld [vmem:[#allocation13 + $0x20] sm:$0xff]  ;;  %v2587_v34 = vcombine.low %v581_v22, %v585_v23 }
 0x1e6   :  { %529 = vmatprep.subr.bf16.mxu0 %v2904_v28  ;;  %v2588_v28 = vcombine.high %v581_v22, %v585_v23  ;;  %v793_v9 = vld [vmem:[#allocation13 + $0x6e0] sm:$0xff] }
 0x1e7   :  { %v653_v14 = vld [vmem:[#allocation13 + $0x280] sm:$0xff] }
 0x1e8   :  { %v657_v15 = vld [vmem:[#allocation13 + $0x2a0] sm:$0xff] }
 0x1e9   :  { %530 = vmatpush1.bf16.msra.mxu0 %v2902_v30  ;;  %v573_v30 = vld [vmem:[#allocation13] sm:$0xff]  ;;  %v2659_v22 = vcombine.low %v653_v14, %v657_v15 }
 0x1ea   :  { %2192 = vmatprep.subr.bf16.mxu0 %v2764_v39  ;;  %v2580_v36 = vcombine.high %v573_v30, %v577_v31  ;;  %v697_v39 = vld [vmem:[#allocation13 + $0x3e0] sm:$0xff] }
 0x1eb   :  { %v781_v16 = vld [vmem:[#allocation13 + $0x680] sm:$0xff] }
 0x1ec   :  { %v785_v17 = vld [vmem:[#allocation13 + $0x6a0] sm:$0xff] }
 0x1ed   :  { %v2787_v23 = vcombine.low %v781_v16, %v785_v17 }
 0x2a4   :  { %v392_v41 = vpop.f32.mrf.mxu0 }
 0x2a5   :  { %v393_v43 = vadd.f32 %v2567_v40, %v392_v41  ;;  %v821_v40 = vld [vmem:[#allocation13 + $0x7c0] sm:$0xff] }
 0x2a6   :  { %v2875_v44 = vpop.f32.mrf.mxu0  ;;  %v825_v41 = vld [vmem:[#allocation13 + $0x7e0] sm:$0xff] }
 0x2a7   :  { %vm396_vm6 = vcmp.ge.f32.partialorder %v393_v43, 0.0  ;;  %v398_v46 = vmul.f32 %v397_v42, %v393_v43  ;;  %v2579_v42 = vcombine.low %v573_v30, %v577_v31  ;;  %v2828_v45 = vcombine.high %v821_v40, %v825_v41 }
 0x2a9   :  { %v399_v50 = vsel %vm396_vm6, %v393_v43, %v398_v46  ;;  %v2707_v43 = vcombine.low %v701_v32, %v705_v33  ;;  %v685_v46 = vld [vmem:[#allocation13 + $0x380] sm:$0xff] }
 0x2aa   :  { %v400_v51 = vpack.c.bf16 %v399_v50, %v399_v50  ;;  %v637_v32 = vld [vmem:[#allocation13 + $0x200] sm:$0xff] }
 0x2ab   :  { %v641_v33 = vld [vmem:[#allocation13 + $0x220] sm:$0xff] }
 0x2ac   :  { %2577 = vmatmul.mubr.msk.bf16.vlgmr.msra.gmra.mxu1 %vm322_vm5, %v400_v51  ;;  %2578 = vmatmul.mubr.msk.bf16.vlgmr.msra.gmra.mxu0 %vm322_vm5, %v400_v51  ;;  %v2827_v51 = vcombine.low %v821_v40, %v825_v41  ;;  %v3180_v40 = vld [vmem:[#allocation13 + $0x1c8] sm:$0xff] }
 0x2ad   :  { %2152 = vmatpush1.bf16.msra.mxu1 %v2635_v35  ;;  %2193 = vmatpush1.bf16.msra.mxu0 %v2763_v38  ;;  %v2715_v35 = vcombine.low %v709_v24, %v713_v25  ;;  %v693_v38 = vld [vmem:[#allocation13 + $0x3c0] sm:$0xff]  ;;  %v3182_v41 = vld [vmem:[#allocation13 + $0x1e8] sm:$0xff] }
 0x2ae   :  { %2153 = vmatprep.subr.bf16.mxu1 %v2628_v52  ;;  %2194 = vmatprep.subr.bf16.mxu0 %v2756_v53  ;;  %v2700_v44 = vcombine.high %v693_v38, %v697_v39  ;;  %v2699_v50 = vcombine.low %v693_v38, %v697_v39  ;;  %v2692_v52 = vcombine.high %v685_v46, %v689_v47  ;;  %v645_v24 = vld [vmem:[#allocation13 + $0x240] sm:$0xff] }
 0x2af   :  { %v2820_v53 = vcombine.high %v813_v48, %v817_v49  ;;  %v649_v25 = vld [vmem:[#allocation13 + $0x260] sm:$0xff] }
 0x2b1   :  { %2154 = vmatpush1.bf16.msra.mxu1 %v2627_v58  ;;  %2195 = vmatpush1.bf16.msra.mxu0 %v2755_v59  ;;  %v2691_v58 = vcombine.low %v685_v46, %v689_v47  ;;  %v2819_v59 = vcombine.low %v813_v48, %v817_v49  ;;  %v411_v48 = vlaneseq }
 0x2b2   :  { %2155 = vmatprep.subr.bf16.mxu1 %v2620_v60  ;;  %2196 = vmatprep.subr.bf16.mxu0 %v2748_v61  ;;  %v2684_v60 = vcombine.high %v677_v54, %v681_v55  ;;  %v2812_v61 = vcombine.high %v805_v56, %v809_v57 }
 0x2b3   :  { %v3196_v49 = vshrl.u32 %v411_v48, 7 }
 0x2b5   :  { %2156 = vmatpush1.bf16.msra.mxu1 %v2619_v2  ;;  %2197 = vmatpush1.bf16.msra.mxu0 %v2747_v3  ;;  %v2683_v2 = vcombine.low %v677_v54, %v681_v55  ;;  %v2811_v3 = vcombine.low %v805_v56, %v809_v57  ;;  %v425_v54 = vsub.s32 3, %v3196_v49 }
 0x2b6   :  { %2157 = vmatprep.subr.bf16.mxu1 %v2612_v4  ;;  %2198 = vmatprep.subr.bf16.mxu0 %v2740_v5  ;;  %v2676_v4 = vcombine.high %v669_v62, %v673_v63  ;;  %v2804_v5 = vcombine.high %v797_v0, %v801_v1 }
 0x2b9   :  { %2158 = vmatpush1.bf16.msra.mxu1 %v2611_v10  ;;  %2199 = vmatpush1.bf16.msra.mxu0 %v2739_v11  ;;  %v2675_v10 = vcombine.low %v669_v62, %v673_v63  ;;  %v2803_v11 = vcombine.low %v797_v0, %v801_v1 }
 0x2ba   :  { %2159 = vmatprep.subr.bf16.mxu1 %v2604_v12  ;;  %2200 = vmatprep.subr.bf16.mxu0 %v2732_v13  ;;  %v2668_v12 = vcombine.high %v661_v6, %v665_v7  ;;  %v2796_v13 = vcombine.high %v789_v8, %v793_v9 }
 0x2bd   :  { %2160 = vmatpush1.bf16.msra.mxu1 %v2603_v18  ;;  %2201 = vmatpush1.bf16.msra.mxu0 %v2731_v19  ;;  %v2667_v18 = vcombine.low %v661_v6, %v665_v7  ;;  %v2795_v19 = vcombine.low %v789_v8, %v793_v9 }
 0x2be   :  { %2161 = vmatprep.subr.bf16.mxu1 %v2596_v20  ;;  %2202 = vmatprep.subr.bf16.mxu0 %v2724_v21  ;;  %v2660_v20 = vcombine.high %v653_v14, %v657_v15  ;;  %v2788_v21 = vcombine.high %v781_v16, %v785_v17  ;;  %v622_v15 = vld [vmem:[#allocation13 + $0x188] sm:$0xff] }
 0x2bf   :  { %v626_v16 = vld [vmem:[#allocation13 + $0x1a8] sm:$0xff] }
 0x2c1   :  { %2162 = vmatpush1.bf16.msra.mxu1 %v2595_v26  ;;  %2203 = vmatpush1.bf16.msra.mxu0 %v2723_v27  ;;  %v773_v26 = vld [vmem:[#allocation13 + $0x640] sm:$0xff]  ;;  %v2652_v27 = vcombine.high %v645_v24, %v649_v25 }
 0x2c2   :  { %2163 = vmatprep.subr.bf16.mxu1 %v2588_v28  ;;  %2204 = vmatprep.subr.bf16.mxu0 %v2716_v29  ;;  %v777_v28 = vld [vmem:[#allocation13 + $0x660] sm:$0xff]  ;;  %v2651_v29 = vcombine.low %v645_v24, %v649_v25  ;;  %v2630_v24 = vcombine.high %v622_v15, %v626_v16  ;;  %v614_v25 = vld [vmem:[#allocation13 + $0x148] sm:$0xff] }
 0x2c3   :  { %v2779_v30 = vcombine.low %v773_v26, %v777_v28  ;;  %v2780_v31 = vcombine.high %v773_v26, %v777_v28  ;;  %v618_v26 = vld [vmem:[#allocation13 + $0x168] sm:$0xff] }
 0x2c4   :  { %v742_v28 = vld [vmem:[#allocation13 + $0x548] sm:$0xff] }
 0x2c5   :  { %2164 = vmatpush1.bf16.msra.mxu1 %v2587_v34  ;;  %2205 = vmatpush1.bf16.msra.mxu0 %v2715_v35  ;;  %v765_v34 = vld [vmem:[#allocation13 + $0x600] sm:$0xff]  ;;  %v2644_v35 = vcombine.high %v637_v32, %v641_v33 }
 0x2c6   :  { %2165 = vmatprep.subr.bf16.mxu1 %v2580_v36  ;;  %2206 = vmatprep.subr.bf16.mxu0 %v2708_v37  ;;  %v769_v36 = vld [vmem:[#allocation13 + $0x620] sm:$0xff]  ;;  %v2643_v37 = vcombine.low %v637_v32, %v641_v33  ;;  %v2622_v32 = vcombine.high %v614_v25, %v618_v26 }
 0x2c7   :  { %v2771_v38 = vcombine.low %v765_v34, %v769_v36  ;;  %v2772_v39 = vcombine.high %v765_v34, %v769_v36  ;;  %v606_v34 = vld [vmem:[#allocation13 + $0x108] sm:$0xff] }
 0x2c8   :  { %v734_v36 = vld [vmem:[#allocation13 + $0x508] sm:$0xff] }
 0x2c9   :  { %2166 = vmatpush1.bf16.msra.mxu1 %v2579_v42  ;;  %2207 = vmatpush1.bf16.msra.mxu0 %v2707_v43  ;;  %v3184_v42 = vld [vmem:[#allocation13 + $0x5c8] sm:$0xff]  ;;  %v2638_v43 = vcombine.high %v3180_v40, %v3182_v41 }
 0x2ca   :  { %2167 = vmatprep.subr.bf16.mxu1 %v2700_v44  ;;  %2208 = vmatprep.subr.bf16.mxu0 %v2828_v45  ;;  %v3188_v44 = vld [vmem:[#allocation13 + $0x5e8] sm:$0xff]  ;;  %v2637_v45 = vcombine.low %v3180_v40, %v3182_v41 }
 0x2cb   :  { %v2765_v46 = vcombine.low %v3184_v42, %v3188_v44  ;;  %v2766_v47 = vcombine.high %v3184_v42, %v3188_v44  ;;  %v598_v42 = vld [vmem:[#allocation13 + $0xc8] sm:$0xff] }
 0x2cc   :  { %v726_v44 = vld [vmem:[#allocation13 + $0x4c8] sm:$0xff] }
 0x2cd   :  { %2168 = vmatpush2.bf16.msra.mxu1 %v2699_v50  ;;  %2209 = vmatpush2.bf16.msra.mxu0 %v2827_v51  ;;  %v413_v50 = vsub.s32 0, %v3196_v49  ;;  %v421_v51 = vsub.s32 2, %v3196_v49 }
 0x2ce   :  { %2169 = vmatprep.subr.bf16.mxu1 %v2692_v52  ;;  %2210 = vmatprep.subr.bf16.mxu0 %v2820_v53  ;;  %v409_v52 = vld [vmem:[%s3284_s9] sm:$0xf]  ;;  %v417_v53 = vsub.s32 1, %v3196_v49 }
 0x2cf   :  { %v414_v55 = vrot.slane %v409_v52, %v413_v50  ;;  %v422_v56 = vrot.slane %v409_v52, %v421_v51 }
 0x2d1   :  { %2170 = vmatpush2.bf16.msra.mxu1 %v2691_v58  ;;  %2211 = vmatpush2.bf16.msra.mxu0 %v2819_v59  ;;  %v560_v58 = vstv %s2561_s7 }
 0x2d2   :  { %2171 = vmatprep.subr.bf16.mxu1 %v2684_v60  ;;  %2212 = vmatprep.subr.bf16.mxu0 %v2812_v61  ;;  %v418_v60 = vrot.slane %v409_v52, %v417_v53  ;;  %v426_v61 = vrot.slane %v409_v52, %v425_v54 }
 0x2d5   :  { %2172 = vmatpush2.bf16.msra.mxu1 %v2683_v2  ;;  %2213 = vmatpush2.bf16.msra.mxu0 %v2811_v3 }
 0x2d6   :  { %2173 = vmatprep.subr.bf16.mxu1 %v2676_v4  ;;  %2214 = vmatprep.subr.bf16.mxu0 %v2804_v5 }
 0x2d9   :  { %2174 = vmatpush2.bf16.msra.mxu1 %v2675_v10  ;;  %2215 = vmatpush2.bf16.msra.mxu0 %v2803_v11 }
 0x2da   :  { %2175 = vmatprep.subr.bf16.mxu1 %v2668_v12  ;;  %2216 = vmatprep.subr.bf16.mxu0 %v2796_v13 }
 0x2dd   :  { %2176 = vmatpush2.bf16.msra.mxu1 %v2667_v18  ;;  %2217 = vmatpush2.bf16.msra.mxu0 %v2795_v19  ;;  %v750_v19 = vld [vmem:[#allocation13 + $0x588] sm:$0xff] }
 0x2de   :  { %2177 = vmatprep.subr.bf16.mxu1 %v2660_v20  ;;  %2218 = vmatprep.subr.bf16.mxu0 %v2788_v21  ;;  %v754_v20 = vld [vmem:[#allocation13 + $0x5a8] sm:$0xff] }
 0x2e1   :  { %2178 = vmatpush2.bf16.msra.mxu1 %v2659_v22  ;;  %2219 = vmatpush2.bf16.msra.mxu0 %v2787_v23 }
 0x2e2   :  { %2179 = vmatprep.subr.bf16.mxu1 %v2652_v27  ;;  %2220 = vmatprep.subr.bf16.mxu0 %v2780_v31  ;;  %v2758_v27 = vcombine.high %v750_v19, %v754_v20  ;;  %v2757_v31 = vcombine.low %v750_v19, %v754_v20  ;;  %v826_v19 = vld [vmem:[#allocation13 + $0x7e8] sm:$0xff] }
 0x2e5   :  { %2180 = vmatpush2.bf16.msra.mxu1 %v2651_v29  ;;  %2221 = vmatpush2.bf16.msra.mxu0 %v2779_v30  ;;  %v746_v29 = vld [vmem:[#allocation13 + $0x568] sm:$0xff]  ;;  %v2629_v30 = vcombine.low %v622_v15, %v626_v16 }
 0x2e6   :  { %2181 = vmatprep.subr.bf16.mxu1 %v2644_v35  ;;  %2222 = vmatprep.subr.bf16.mxu0 %v2772_v39  ;;  %v2750_v33 = vcombine.high %v742_v28, %v746_v29  ;;  %v610_v35 = vld [vmem:[#allocation13 + $0x128] sm:$0xff]  ;;  %v2749_v39 = vcombine.low %v742_v28, %v746_v29 }
 0x2e7   :  { %v2614_v40 = vcombine.high %v606_v34, %v610_v35  ;;  %v694_v15 = vld [vmem:[#allocation13 + $0x3c8] sm:$0xff] }
 0x2e8   :  { %v698_v16 = vld [vmem:[#allocation13 + $0x3e8] sm:$0xff] }
 0x2e9   :  { %2182 = vmatpush2.bf16.msra.mxu1 %v2643_v37  ;;  %2223 = vmatpush2.bf16.msra.mxu0 %v2771_v38  ;;  %v738_v37 = vld [vmem:[#allocation13 + $0x528] sm:$0xff]  ;;  %v2621_v38 = vcombine.low %v614_v25, %v618_v26  ;;  %v2702_v25 = vcombine.high %v694_v15, %v698_v16 }
 0x2ea   :  { %2233 = vmatprep.subr.bf16.mxu1 %v2638_v43  ;;  %2274 = vmatprep.subr.bf16.mxu0 %v2766_v47  ;;  %v2742_v41 = vcombine.high %v734_v36, %v738_v37  ;;  %v602_v43 = vld [vmem:[#allocation13 + $0xe8] sm:$0xff]  ;;  %v2741_v47 = vcombine.low %v734_v36, %v738_v37 }
 0x2eb   :  { %v2606_v48 = vcombine.high %v598_v42, %v602_v43  ;;  %v690_v28 = vld [vmem:[#allocation13 + $0x3a8] sm:$0xff] }
 0x2ec   :  { %v814_v29 = vld [vmem:[#allocation13 + $0x788] sm:$0xff] }
 0x2ed   :  { %v682_v36 = vld [vmem:[#allocation13 + $0x368] sm:$0xff] }
 0x2ee   :  { %v806_v37 = vld [vmem:[#allocation13 + $0x748] sm:$0xff] }
 0x36c   :  { %v508_v57 = vpop.f32.mrf.mxu1  ;;  %v549_v59 = vpop.f32.mrf.mxu0 }
 0x36d   :  { %v509_v62 = vadd.f32 %v508_v57, %v414_v55  ;;  %v550_v63 = vadd.f32 %v549_v59, %v422_v56  ;;  %v590_v55 = vld [vmem:[#allocation13 + $0x88] sm:$0xff]  ;;  %v2605_v59 = vcombine.low %v598_v42, %v602_v43 }
 0x36e   :  { %v510_v0 = vpop.f32.mrf.mxu1  ;;  %v551_v1 = vpop.f32.mrf.mxu0  ;;  %v594_v56 = vld [vmem:[#allocation13 + $0xa8] sm:$0xff] }
 0x36f   :  { %v561_v2 = vmul.f32 %v560_v58, %v509_v62  ;;  %vm556_vm7 = vcmp.ge.f32.partialorder %v509_v62, 0.0  ;;  %v563_v3 = vmul.f32 %v560_v58, %v550_v63  ;;  %v511_v4 = vadd.f32 %v510_v0, %v418_v60  ;;  %v718_v57 = vld [vmem:[#allocation13 + $0x488] sm:$0xff] }
 0x370   :  { %v552_v5 = vadd.f32 %v551_v1, %v426_v61  ;;  %v512_v6 = vpop.f32.mrf.mxu1  ;;  %v553_v7 = vpop.f32.mrf.mxu0  ;;  %vm558_vm8 = vcmp.ge.f32.partialorder %v550_v63, 0.0  ;;  %v2598_v61 = vcombine.high %v590_v55, %v594_v56  ;;  %v586_v0 = vld [vmem:[#allocation13 + $0x68] sm:$0xff] }
 0x371   :  { %vm557_vm9 = vcmp.ge.f32.partialorder %v511_v4, 0.0  ;;  %v562_v8 = vmul.f32 %v560_v58, %v511_v4  ;;  %v565_v11 = vsel %vm556_vm7, %v509_v62, %v561_v2  ;;  %v567_v13 = vsel %vm558_vm8, %v550_v63, %v563_v3  ;;  %v582_v63 = vld [vmem:[#allocation13 + $0x48] sm:$0xff] }
 0x372   :  { %v513_v9 = vpop.f32.mrf.mxu1  ;;  %v554_v10 = vpop.f32.mrf.mxu0  ;;  %vm559_vm10 = vcmp.ge.f32.partialorder %v552_v5, 0.0  ;;  %v564_v12 = vmul.f32 %v560_v58, %v552_v5  ;;  %v3215_v21 = vpack.c.bf16 %v565_v11, %v565_v11  ;;  %v3219_v23 = vpack.c.bf16 %v567_v13, %v567_v13  ;;  %v722_v58 = vld [vmem:[#allocation13 + $0x4a8] sm:$0xff] }
 0x373   :  { %v566_v14 = vsel %vm557_vm9, %v511_v4, %v562_v8  ;;  %v2726_v62 = vcombine.high %v718_v57, %v722_v58  ;;  %v710_v1 = vld [vmem:[#allocation13 + $0x448] sm:$0xff]  ;;  %v2597_v3 = vcombine.low %v590_v55, %v594_v56  ;;  %v2725_v4 = vcombine.low %v718_v57, %v722_v58 }
 0x374   :  { %v3213_v17 = vpack.c.bf16 %v566_v14, %v566_v14  ;;  %v568_v18 = vsel %vm559_vm10, %v552_v5, %v564_v12  ;;  %v714_v2 = vld [vmem:[#allocation13 + $0x468] sm:$0xff]  ;;  %v2590_v5 = vcombine.high %v582_v63, %v586_v0  ;;  %v2589_v11 = vcombine.low %v582_v63, %v586_v0 }
 0x375   :  { %v3217_v22 = vpack.c.bf16 %v568_v18, %v568_v18  ;;  %v2718_v6 = vcombine.high %v710_v1, %v714_v2  ;;  %v574_v7 = vld [vmem:[#allocation13 + $0x8] sm:$0xff]  ;;  %v2717_v12 = vcombine.low %v710_v1, %v714_v2 }
 0x376   :  { %2183 = vmatprep.mubr.bf16.mxu1 %v3213_v17  ;;  %v578_v8 = vld [vmem:[#allocation13 + $0x28] sm:$0xff] }
 0x377   :  { %2224 = vmatprep.mubr.bf16.mxu0 %v3217_v22  ;;  %2184 = vmatmul.mubr.bf16.vlgmr.msra.gmra.mxu1 %v3215_v21  ;;  %v702_v9 = vld [vmem:[#allocation13 + $0x408] sm:$0xff]  ;;  %v2582_v13 = vcombine.high %v574_v7, %v578_v8  ;;  %v2581_v20 = vcombine.low %v574_v7, %v578_v8 }
 0x378   :  { %2225 = vmatmul.mubr.bf16.vlgmr.msra.gmra.mxu0 %v3219_v23  ;;  %2234 = vmatpush1.bf16.msra.mxu1 %v2637_v45  ;;  %v730_v45 = vld [vmem:[#allocation13 + $0x4e8] sm:$0xff] }
 0x379   :  { %2275 = vmatpush1.bf16.msra.mxu0 %v2765_v46  ;;  %2265 = vmatprep.mubr.bf16.mxu1 %v3213_v17  ;;  %v2613_v46 = vcombine.low %v606_v34, %v610_v35  ;;  %v2734_v52 = vcombine.high %v726_v44, %v730_v45  ;;  %v2733_v60 = vcombine.low %v726_v44, %v730_v45  ;;  %v706_v10 = vld [vmem:[#allocation13 + $0x428] sm:$0xff] }
 0x37a   :  { %2306 = vmatprep.mubr.bf16.mxu0 %v3217_v22  ;;  %2235 = vmatprep.subr.bf16.mxu1 %v2630_v24  ;;  %v2710_v14 = vcombine.high %v702_v9, %v706_v10  ;;  %v822_v18 = vld [vmem:[#allocation13 + $0x7c8] sm:$0xff]  ;;  %v2709_v24 = vcombine.low %v702_v9, %v706_v10 }
 0x37b   :  { %2276 = vmatprep.subr.bf16.mxu0 %v2758_v27  ;;  %v2830_v26 = vcombine.high %v822_v18, %v826_v19  ;;  %v686_v27 = vld [vmem:[#allocation13 + $0x388] sm:$0xff] }
 0x37c   :  { %2236 = vmatpush1.bf16.msra.mxu1 %v2629_v30  ;;  %v818_v30 = vld [vmem:[#allocation13 + $0x7a8] sm:$0xff] }
 0x37d   :  { %2277 = vmatpush1.bf16.msra.mxu0 %v2757_v31  ;;  %2237 = vmatprep.subr.bf16.mxu1 %v2622_v32  ;;  %v2701_v31 = vcombine.low %v694_v15, %v698_v16  ;;  %v2829_v32 = vcombine.low %v822_v18, %v826_v19  ;;  %v2822_v34 = vcombine.high %v814_v29, %v818_v30  ;;  %v678_v35 = vld [vmem:[#allocation13 + $0x348] sm:$0xff] }
 0x37e   :  { %2278 = vmatprep.subr.bf16.mxu0 %v2750_v33  ;;  %v2694_v33 = vcombine.high %v686_v27, %v690_v28  ;;  %v670_v43 = vld [vmem:[#allocation13 + $0x308] sm:$0xff] }
 0x37f   :  { %v674_v44 = vld [vmem:[#allocation13 + $0x328] sm:$0xff] }
 0x380   :  { %2238 = vmatpush1.bf16.msra.mxu1 %v2621_v38  ;;  %v810_v38 = vld [vmem:[#allocation13 + $0x768] sm:$0xff] }
 0x381   :  { %2279 = vmatpush1.bf16.msra.mxu0 %v2749_v39  ;;  %2239 = vmatprep.subr.bf16.mxu1 %v2614_v40  ;;  %v2693_v39 = vcombine.low %v686_v27, %v690_v28  ;;  %v2821_v40 = vcombine.low %v814_v29, %v818_v30  ;;  %v2814_v42 = vcombine.high %v806_v37, %v810_v38  ;;  %v798_v45 = vld [vmem:[#allocation13 + $0x708] sm:$0xff]  ;;  %v631_v28 = vld [vmem:[#allocation13 + $0x1d0] sm:$0xff] }
 0x382   :  { %2280 = vmatprep.subr.bf16.mxu0 %v2742_v41  ;;  %v2686_v41 = vcombine.high %v678_v35, %v682_v36  ;;  %v662_v56 = vld [vmem:[#allocation13 + $0x2c8] sm:$0xff]  ;;  %v635_v29 = vld [vmem:[#allocation13 + $0x1f0] sm:$0xff] }
 0x383   :  { %v666_v57 = vld [vmem:[#allocation13 + $0x2e8] sm:$0xff]  ;;  %v759_v30 = vld [vmem:[#allocation13 + $0x5d0] sm:$0xff] }
 0x384   :  { %2240 = vmatpush1.bf16.msra.mxu1 %v2613_v46  ;;  %v802_v46 = vld [vmem:[#allocation13 + $0x728] sm:$0xff] }
 0x385   :  { %2281 = vmatpush1.bf16.msra.mxu0 %v2741_v47  ;;  %2241 = vmatprep.subr.bf16.mxu1 %v2606_v48  ;;  %v2685_v47 = vcombine.low %v678_v35, %v682_v36  ;;  %v2813_v48 = vcombine.low %v806_v37, %v810_v38  ;;  %v2806_v55 = vcombine.high %v798_v45, %v802_v46  ;;  %v790_v58 = vld [vmem:[#allocation13 + $0x6c8] sm:$0xff]  ;;  %v623_v36 = vld [vmem:[#allocation13 + $0x190] sm:$0xff] }
 0x386   :  { %2282 = vmatprep.subr.bf16.mxu0 %v2734_v52  ;;  %v2678_v52 = vcombine.high %v670_v43, %v674_v44  ;;  %v654_v0 = vld [vmem:[#allocation13 + $0x288] sm:$0xff]  ;;  %v627_v37 = vld [vmem:[#allocation13 + $0x1b0] sm:$0xff]  ;;  %v2639_v38 = vcombine.low %v631_v28, %v635_v29 }
 0x387   :  { %v658_v1 = vld [vmem:[#allocation13 + $0x2a8] sm:$0xff] }
 0x388   :  { %2242 = vmatpush1.bf16.msra.mxu1 %v2605_v59  ;;  %v794_v59 = vld [vmem:[#allocation13 + $0x6e8] sm:$0xff] }
 0x389   :  { %2283 = vmatpush1.bf16.msra.mxu0 %v2733_v60  ;;  %2243 = vmatprep.subr.bf16.mxu1 %v2598_v61  ;;  %v2677_v60 = vcombine.low %v670_v43, %v674_v44  ;;  %v2805_v61 = vcombine.low %v798_v45, %v802_v46  ;;  %v2798_v63 = vcombine.high %v790_v58, %v794_v59  ;;  %v782_v2 = vld [vmem:[#allocation13 + $0x688] sm:$0xff]  ;;  %v615_v43 = vld [vmem:[#allocation13 + $0x150] sm:$0xff] }
 0x38a   :  { %2284 = vmatprep.subr.bf16.mxu0 %v2726_v62  ;;  %v2670_v62 = vcombine.high %v662_v56, %v666_v57  ;;  %v646_v8 = vld [vmem:[#allocation13 + $0x248] sm:$0xff]  ;;  %v619_v44 = vld [vmem:[#allocation13 + $0x170] sm:$0xff] }
 0x38b   :  { %v650_v9 = vld [vmem:[#allocation13 + $0x268] sm:$0xff]  ;;  %v743_v46 = vld [vmem:[#allocation13 + $0x550] sm:$0xff] }
 0x38c   :  { %2244 = vmatpush1.bf16.msra.mxu1 %v2597_v3  ;;  %v786_v3 = vld [vmem:[#allocation13 + $0x6a8] sm:$0xff] }
 0x38d   :  { %2285 = vmatpush1.bf16.msra.mxu0 %v2725_v4  ;;  %2245 = vmatprep.subr.bf16.mxu1 %v2590_v5  ;;  %v2669_v4 = vcombine.low %v662_v56, %v666_v57  ;;  %v2797_v5 = vcombine.low %v790_v58, %v794_v59  ;;  %v2790_v7 = vcombine.high %v782_v2, %v786_v3  ;;  %v774_v10 = vld [vmem:[#allocation13 + $0x648] sm:$0xff]  ;;  %v607_v57 = vld [vmem:[#allocation13 + $0x110] sm:$0xff] }
 0x38e   :  { %2286 = vmatprep.subr.bf16.mxu0 %v2718_v6  ;;  %v2662_v6 = vcombine.high %v654_v0, %v658_v1  ;;  %v638_v16 = vld [vmem:[#allocation13 + $0x208] sm:$0xff]  ;;  %v611_v58 = vld [vmem:[#allocation13 + $0x130] sm:$0xff] }
 0x38f   :  { %v642_v18 = vld [vmem:[#allocation13 + $0x228] sm:$0xff]  ;;  %v735_v59 = vld [vmem:[#allocation13 + $0x510] sm:$0xff] }
 0x390   :  { %2246 = vmatpush1.bf16.msra.mxu1 %v2589_v11  ;;  %v778_v11 = vld [vmem:[#allocation13 + $0x668] sm:$0xff] }
 0x391   :  { %2287 = vmatpush1.bf16.msra.mxu0 %v2717_v12  ;;  %2247 = vmatprep.subr.bf16.mxu1 %v2582_v13  ;;  %v2661_v12 = vcombine.low %v654_v0, %v658_v1  ;;  %v2789_v13 = vcombine.low %v782_v2, %v786_v3  ;;  %v2782_v15 = vcombine.high %v774_v10, %v778_v11  ;;  %v766_v19 = vld [vmem:[#allocation13 + $0x608] sm:$0xff]  ;;  %v599_v1 = vld [vmem:[#allocation13 + $0xd0] sm:$0xff] }
 0x392   :  { %2288 = vmatprep.subr.bf16.mxu0 %v2710_v14  ;;  %v2654_v14 = vcombine.high %v646_v8, %v650_v9  ;;  %v603_v2 = vld [vmem:[#allocation13 + $0xf0] sm:$0xff] }
 0x393   :  { %v727_v3 = vld [vmem:[#allocation13 + $0x4d0] sm:$0xff] }
 0x394   :  { %2248 = vmatpush1.bf16.msra.mxu1 %v2581_v20  ;;  %v770_v20 = vld [vmem:[#allocation13 + $0x628] sm:$0xff] }
 0x395   :  { %2289 = vmatpush1.bf16.msra.mxu0 %v2709_v24  ;;  %2249 = vmatprep.subr.bf16.mxu1 %v2702_v25  ;;  %v2653_v24 = vcombine.low %v646_v8, %v650_v9  ;;  %v2781_v25 = vcombine.low %v774_v10, %v778_v11  ;;  %v2774_v27 = vcombine.high %v766_v19, %v770_v20  ;;  %v591_v9 = vld [vmem:[#allocation13 + $0x90] sm:$0xff] }
 0x396   :  { %2290 = vmatprep.subr.bf16.mxu0 %v2830_v26  ;;  %v2646_v26 = vcombine.high %v638_v16, %v642_v18  ;;  %v595_v10 = vld [vmem:[#allocation13 + $0xb0] sm:$0xff] }
 0x397   :  { %v719_v11 = vld [vmem:[#allocation13 + $0x490] sm:$0xff] }
 0x398   :  { %2250 = vmatpush2.bf16.msra.mxu1 %v2701_v31  ;;  %v763_v31 = vld [vmem:[#allocation13 + $0x5f0] sm:$0xff] }
 0x399   :  { %2291 = vmatpush2.bf16.msra.mxu0 %v2829_v32  ;;  %2251 = vmatprep.subr.bf16.mxu1 %v2694_v33  ;;  %v2645_v32 = vcombine.low %v638_v16, %v642_v18  ;;  %v2773_v33 = vcombine.low %v766_v19, %v770_v20  ;;  %v2768_v35 = vcombine.high %v759_v30, %v763_v31  ;;  %v583_v18 = vld [vmem:[#allocation13 + $0x50] sm:$0xff] }
 0x39a   :  { %2292 = vmatprep.subr.bf16.mxu0 %v2822_v34  ;;  %v2640_v34 = vcombine.high %v631_v28, %v635_v29  ;;  %v587_v19 = vld [vmem:[#allocation13 + $0x70] sm:$0xff] }
 0x39b   :  { %v711_v20 = vld [vmem:[#allocation13 + $0x450] sm:$0xff] }
 0x39c   :  { %2252 = vmatpush2.bf16.msra.mxu1 %v2693_v39  ;;  %v751_v39 = vld [vmem:[#allocation13 + $0x590] sm:$0xff] }
 0x39d   :  { %2293 = vmatpush2.bf16.msra.mxu0 %v2821_v40  ;;  %2253 = vmatprep.subr.bf16.mxu1 %v2686_v41  ;;  %v755_v40 = vld [vmem:[#allocation13 + $0x5b0] sm:$0xff]  ;;  %v2767_v41 = vcombine.low %v759_v30, %v763_v31 }
 0x39e   :  { %2294 = vmatprep.subr.bf16.mxu0 %v2814_v42  ;;  %v2632_v42 = vcombine.high %v623_v36, %v627_v37  ;;  %v2760_v45 = vcombine.high %v751_v39, %v755_v40  ;;  %v575_v29 = vld [vmem:[#allocation13 + $0x10] sm:$0xff] }
 0x39f   :  { %v579_v30 = vld [vmem:[#allocation13 + $0x30] sm:$0xff] }
 0x3a0   :  { %2254 = vmatpush2.bf16.msra.mxu1 %v2685_v47  ;;  %v747_v47 = vld [vmem:[#allocation13 + $0x570] sm:$0xff] }
 0x3a1   :  { %2295 = vmatpush2.bf16.msra.mxu0 %v2813_v48  ;;  %2255 = vmatprep.subr.bf16.mxu1 %v2678_v52  ;;  %v2631_v48 = vcombine.low %v623_v36, %v627_v37  ;;  %v2759_v52 = vcombine.low %v751_v39, %v755_v40  ;;  %v2752_v56 = vcombine.high %v743_v46, %v747_v47  ;;  %v703_v31 = vld [vmem:[#allocation13 + $0x410] sm:$0xff] }
 0x3a2   :  { %2296 = vmatprep.subr.bf16.mxu0 %v2806_v55  ;;  %v2624_v55 = vcombine.high %v615_v43, %v619_v44  ;;  %v695_v37 = vld [vmem:[#allocation13 + $0x3d0] sm:$0xff] }
 0x3a3   :  { %v823_v39 = vld [vmem:[#allocation13 + $0x7d0] sm:$0xff] }
 0x3a4   :  { %2256 = vmatpush2.bf16.msra.mxu1 %v2677_v60  ;;  %v739_v60 = vld [vmem:[#allocation13 + $0x530] sm:$0xff] }
 0x3a5   :  { %2297 = vmatpush2.bf16.msra.mxu0 %v2805_v61  ;;  %2257 = vmatprep.subr.bf16.mxu1 %v2670_v62  ;;  %v2623_v61 = vcombine.low %v615_v43, %v619_v44  ;;  %v2751_v62 = vcombine.low %v743_v46, %v747_v47  ;;  %v2744_v0 = vcombine.high %v735_v59, %v739_v60  ;;  %v827_v40 = vld [vmem:[#allocation13 + $0x7f0] sm:$0xff] }
 0x3a6   :  { %2298 = vmatprep.subr.bf16.mxu0 %v2798_v63  ;;  %v2616_v63 = vcombine.high %v607_v57, %v611_v58  ;;  %v2832_v44 = vcombine.high %v823_v39, %v827_v40  ;;  %v691_v46 = vld [vmem:[#allocation13 + $0x3b0] sm:$0xff] }
 0x3a7   :  { %v815_v47 = vld [vmem:[#allocation13 + $0x790] sm:$0xff] }
 0x3a8   :  { %2258 = vmatpush2.bf16.msra.mxu1 %v2669_v4  ;;  %v731_v4 = vld [vmem:[#allocation13 + $0x4f0] sm:$0xff] }
 0x3a9   :  { %2299 = vmatpush2.bf16.msra.mxu0 %v2797_v5  ;;  %2259 = vmatprep.subr.bf16.mxu1 %v2662_v6  ;;  %v2615_v5 = vcombine.low %v607_v57, %v611_v58  ;;  %v2743_v6 = vcombine.low %v735_v59, %v739_v60  ;;  %v2736_v8 = vcombine.high %v727_v3, %v731_v4  ;;  %v679_v58 = vld [vmem:[#allocation13 + $0x350] sm:$0xff] }
 0x3aa   :  { %2300 = vmatprep.subr.bf16.mxu0 %v2790_v7  ;;  %v2608_v7 = vcombine.high %v599_v1, %v603_v2  ;;  %v683_v59 = vld [vmem:[#allocation13 + $0x370] sm:$0xff] }
 0x3ab   :  { %v807_v60 = vld [vmem:[#allocation13 + $0x750] sm:$0xff] }
 0x3ac   :  { %2260 = vmatpush2.bf16.msra.mxu1 %v2661_v12  ;;  %v723_v12 = vld [vmem:[#allocation13 + $0x4b0] sm:$0xff] }
 0x3ad   :  { %2301 = vmatpush2.bf16.msra.mxu0 %v2789_v13  ;;  %2261 = vmatprep.subr.bf16.mxu1 %v2654_v14  ;;  %v2607_v13 = vcombine.low %v599_v1, %v603_v2  ;;  %v2735_v14 = vcombine.low %v727_v3, %v731_v4  ;;  %v2728_v16 = vcombine.high %v719_v11, %v723_v12  ;;  %v671_v2 = vld [vmem:[#allocation13 + $0x310] sm:$0xff] }
 0x3ae   :  { %2302 = vmatprep.subr.bf16.mxu0 %v2782_v15  ;;  %v2600_v15 = vcombine.high %v591_v9, %v595_v10  ;;  %v675_v3 = vld [vmem:[#allocation13 + $0x330] sm:$0xff] }
 0x3af   :  { %v799_v4 = vld [vmem:[#allocation13 + $0x710] sm:$0xff] }
 0x3b0   :  { %2262 = vmatpush2.bf16.msra.mxu1 %v2653_v24  ;;  %v715_v24 = vld [vmem:[#allocation13 + $0x470] sm:$0xff] }
 0x3b1   :  { %2303 = vmatpush2.bf16.msra.mxu0 %v2781_v25  ;;  %2263 = vmatprep.subr.bf16.mxu1 %v2646_v26  ;;  %v2599_v25 = vcombine.low %v591_v9, %v595_v10  ;;  %v2727_v26 = vcombine.low %v719_v11, %v723_v12  ;;  %v2720_v28 = vcombine.high %v711_v20, %v715_v24  ;;  %v663_v10 = vld [vmem:[#allocation13 + $0x2d0] sm:$0xff] }
 0x3b2   :  { %2304 = vmatprep.subr.bf16.mxu0 %v2774_v27  ;;  %v2592_v27 = vcombine.high %v583_v18, %v587_v19  ;;  %v667_v11 = vld [vmem:[#allocation13 + $0x2f0] sm:$0xff] }
 0x3b3   :  { %v791_v12 = vld [vmem:[#allocation13 + $0x6d0] sm:$0xff] }
 0x3b4   :  { %2264 = vmatpush2.bf16.msra.mxu1 %v2645_v32  ;;  %v707_v32 = vld [vmem:[#allocation13 + $0x430] sm:$0xff] }
 0x3b5   :  { %2305 = vmatpush2.bf16.msra.mxu0 %v2773_v33  ;;  %2315 = vmatprep.subr.bf16.mxu1 %v2640_v34  ;;  %v2591_v33 = vcombine.low %v583_v18, %v587_v19  ;;  %v2719_v34 = vcombine.low %v711_v20, %v715_v24  ;;  %v2712_v36 = vcombine.high %v703_v31, %v707_v32  ;;  %v655_v19 = vld [vmem:[#allocation13 + $0x290] sm:$0xff] }
 0x3b6   :  { %2356 = vmatprep.subr.bf16.mxu0 %v2768_v35  ;;  %v2584_v35 = vcombine.high %v575_v29, %v579_v30  ;;  %v659_v20 = vld [vmem:[#allocation13 + $0x2b0] sm:$0xff] }
 0x3b7   :  { %2266 = vmatmul.mubr.bf16.vlgmr.msra.gmra.mxu1 %v3215_v21  ;;  %v783_v24 = vld [vmem:[#allocation13 + $0x690] sm:$0xff] }
 0x3b8   :  { %2307 = vmatmul.mubr.bf16.vlgmr.msra.gmra.mxu0 %v3219_v23  ;;  %2316 = vmatpush1.bf16.msra.mxu1 %v2639_v38  ;;  %v699_v38 = vld [vmem:[#allocation13 + $0x3f0] sm:$0xff] }
 0x3b9   :  { %2347 = vmatprep.mubr.bf16.mxu1 %v3213_v17  ;;  %2357 = vmatpush1.bf16.msra.mxu0 %v2767_v41  ;;  %v2583_v41 = vcombine.low %v575_v29, %v579_v30  ;;  %v2704_v43 = vcombine.high %v695_v37, %v699_v38  ;;  %v647_v30 = vld [vmem:[#allocation13 + $0x250] sm:$0xff] }
 0x3ba   :  { %2388 = vmatprep.mubr.bf16.mxu0 %v3217_v22  ;;  %2317 = vmatprep.subr.bf16.mxu1 %v2632_v42  ;;  %v2711_v42 = vcombine.low %v703_v31, %v707_v32  ;;  %v651_v31 = vld [vmem:[#allocation13 + $0x270] sm:$0xff] }
 0x3bb   :  { %2358 = vmatprep.subr.bf16.mxu0 %v2760_v45  ;;  %v687_v45 = vld [vmem:[#allocation13 + $0x390] sm:$0xff] }
 0x3bc   :  { %2318 = vmatpush1.bf16.msra.mxu1 %v2631_v48  ;;  %v819_v48 = vld [vmem:[#allocation13 + $0x7b0] sm:$0xff] }
 0x3bd   :  { %2359 = vmatpush1.bf16.msra.mxu0 %v2759_v52  ;;  %2319 = vmatprep.subr.bf16.mxu1 %v2624_v55  ;;  %v2703_v52 = vcombine.low %v695_v37, %v699_v38  ;;  %v2831_v55 = vcombine.low %v823_v39, %v827_v40  ;;  %v2824_v57 = vcombine.high %v815_v47, %v819_v48  ;;  %v775_v32 = vld [vmem:[#allocation13 + $0x650] sm:$0xff] }
 0x3be   :  { %2360 = vmatprep.subr.bf16.mxu0 %v2752_v56  ;;  %v2696_v56 = vcombine.high %v687_v45, %v691_v46  ;;  %v639_v38 = vld [vmem:[#allocation13 + $0x210] sm:$0xff] }
 0x3bf   :  { %v643_v39 = vld [vmem:[#allocation13 + $0x230] sm:$0xff] }
 0x3c0   :  { %2320 = vmatpush1.bf16.msra.mxu1 %v2623_v61  ;;  %v811_v61 = vld [vmem:[#allocation13 + $0x770] sm:$0xff] }
 0x3c1   :  { %2361 = vmatpush1.bf16.msra.mxu0 %v2751_v62  ;;  %2321 = vmatprep.subr.bf16.mxu1 %v2616_v63  ;;  %v2695_v62 = vcombine.low %v687_v45, %v691_v46  ;;  %v2823_v63 = vcombine.low %v815_v47, %v819_v48  ;;  %v2816_v1 = vcombine.high %v807_v60, %v811_v61  ;;  %v767_v40 = vld [vmem:[#allocation13 + $0x610] sm:$0xff]  ;;  %v632_v46 = vld [vmem:[#allocation13 + $0x1d8] sm:$0xff] }
 0x3c2   :  { %2362 = vmatprep.subr.bf16.mxu0 %v2744_v0  ;;  %v2688_v0 = vcombine.high %v679_v58, %v683_v59  ;;  %v636_v47 = vld [vmem:[#allocation13 + $0x1f8] sm:$0xff] }
 0x3c3   :  { %v760_v48 = vld [vmem:[#allocation13 + $0x5d8] sm:$0xff] }
 0x3c4   :  { %2322 = vmatpush1.bf16.msra.mxu1 %v2615_v5  ;;  %v803_v5 = vld [vmem:[#allocation13 + $0x730] sm:$0xff] }
 0x3c5   :  { %2363 = vmatpush1.bf16.msra.mxu0 %v2743_v6  ;;  %2323 = vmatprep.subr.bf16.mxu1 %v2608_v7  ;;  %v2687_v6 = vcombine.low %v679_v58, %v683_v59  ;;  %v2815_v7 = vcombine.low %v807_v60, %v811_v61  ;;  %v2808_v9 = vcombine.high %v799_v4, %v803_v5  ;;  %v624_v59 = vld [vmem:[#allocation13 + $0x198] sm:$0xff] }
 0x3c6   :  { %2364 = vmatprep.subr.bf16.mxu0 %v2736_v8  ;;  %v2680_v8 = vcombine.high %v671_v2, %v675_v3  ;;  %v628_v60 = vld [vmem:[#allocation13 + $0x1b8] sm:$0xff]  ;;  %v2641_v61 = vcombine.low %v632_v46, %v636_v47 }
 0x3c8   :  { %2324 = vmatpush1.bf16.msra.mxu1 %v2607_v13  ;;  %v795_v13 = vld [vmem:[#allocation13 + $0x6f0] sm:$0xff] }
 0x3c9   :  { %2365 = vmatpush1.bf16.msra.mxu0 %v2735_v14  ;;  %2325 = vmatprep.subr.bf16.mxu1 %v2600_v15  ;;  %v2679_v14 = vcombine.low %v671_v2, %v675_v3  ;;  %v2807_v15 = vcombine.low %v799_v4, %v803_v5  ;;  %v2800_v18 = vcombine.high %v791_v12, %v795_v13  ;;  %v616_v2 = vld [vmem:[#allocation13 + $0x158] sm:$0xff] }
 0x3ca   :  { %2366 = vmatprep.subr.bf16.mxu0 %v2728_v16  ;;  %v2672_v16 = vcombine.high %v663_v10, %v667_v11  ;;  %v620_v3 = vld [vmem:[#allocation13 + $0x178] sm:$0xff] }
 0x3cb   :  { %v744_v5 = vld [vmem:[#allocation13 + $0x558] sm:$0xff] }
 0x3cc   :  { %2326 = vmatpush1.bf16.msra.mxu1 %v2599_v25  ;;  %v787_v25 = vld [vmem:[#allocation13 + $0x6b0] sm:$0xff] }
 0x3cd   :  { %2367 = vmatpush1.bf16.msra.mxu0 %v2727_v26  ;;  %2327 = vmatprep.subr.bf16.mxu1 %v2592_v27  ;;  %v2671_v26 = vcombine.low %v663_v10, %v667_v11  ;;  %v2799_v27 = vcombine.low %v791_v12, %v795_v13  ;;  %v2792_v29 = vcombine.high %v783_v24, %v787_v25  ;;  %v608_v11 = vld [vmem:[#allocation13 + $0x118] sm:$0xff] }
 0x3ce   :  { %2368 = vmatprep.subr.bf16.mxu0 %v2720_v28  ;;  %v2664_v28 = vcombine.high %v655_v19, %v659_v20  ;;  %v612_v12 = vld [vmem:[#allocation13 + $0x138] sm:$0xff] }
 0x3cf   :  { %v736_v13 = vld [vmem:[#allocation13 + $0x518] sm:$0xff] }
 0x3d0   :  { %2328 = vmatpush1.bf16.msra.mxu1 %v2591_v33  ;;  %v779_v33 = vld [vmem:[#allocation13 + $0x670] sm:$0xff] }
 0x3d1   :  { %2369 = vmatpush1.bf16.msra.mxu0 %v2719_v34  ;;  %2329 = vmatprep.subr.bf16.mxu1 %v2584_v35  ;;  %v2663_v34 = vcombine.low %v655_v19, %v659_v20  ;;  %v2791_v35 = vcombine.low %v783_v24, %v787_v25  ;;  %v2784_v37 = vcombine.high %v775_v32, %v779_v33  ;;  %v600_v19 = vld [vmem:[#allocation13 + $0xd8] sm:$0xff] }
 0x3d2   :  { %2370 = vmatprep.subr.bf16.mxu0 %v2712_v36  ;;  %v2656_v36 = vcombine.high %v647_v30, %v651_v31  ;;  %v604_v20 = vld [vmem:[#allocation13 + $0xf8] sm:$0xff] }
 0x3d3   :  { %v728_v24 = vld [vmem:[#allocation13 + $0x4d8] sm:$0xff] }
 0x3d4   :  { %2330 = vmatpush1.bf16.msra.mxu1 %v2583_v41  ;;  %v771_v41 = vld [vmem:[#allocation13 + $0x630] sm:$0xff]  ;;  %v732_v25 = vld [vmem:[#allocation13 + $0x4f8] sm:$0xff] }
 0x3d5   :  { %2371 = vmatpush1.bf16.msra.mxu0 %v2711_v42  ;;  %2331 = vmatprep.subr.bf16.mxu1 %v2704_v43  ;;  %v2655_v42 = vcombine.low %v647_v30, %v651_v31  ;;  %v2783_v43 = vcombine.low %v775_v32, %v779_v33  ;;  %v2776_v45 = vcombine.high %v767_v40, %v771_v41  ;;  %v596_v30 = vld [vmem:[#allocation13 + $0xb8] sm:$0xff] }
 0x3d6   :  { %2372 = vmatprep.subr.bf16.mxu0 %v2832_v44  ;;  %v2648_v44 = vcombine.high %v639_v38, %v643_v39  ;;  %v720_v31 = vld [vmem:[#allocation13 + $0x498] sm:$0xff]  ;;  %v2609_v33 = vcombine.low %v600_v19, %v604_v20 }
 0x3d7   :  { %v724_v32 = vld [vmem:[#allocation13 + $0x4b8] sm:$0xff] }
 0x3d8   :  { %2332 = vmatpush2.bf16.msra.mxu1 %v2703_v52  ;;  %v764_v52 = vld [vmem:[#allocation13 + $0x5f8] sm:$0xff] }
 0x3d9   :  { %2373 = vmatpush2.bf16.msra.mxu0 %v2831_v55  ;;  %2333 = vmatprep.subr.bf16.mxu1 %v2696_v56  ;;  %v2647_v55 = vcombine.low %v639_v38, %v643_v39  ;;  %v2775_v56 = vcombine.low %v767_v40, %v771_v41  ;;  %v2770_v58 = vcombine.high %v760_v48, %v764_v52  ;;  %v588_v38 = vld [vmem:[#allocation13 + $0x78] sm:$0xff] }
 0x3da   :  { %2374 = vmatprep.subr.bf16.mxu0 %v2824_v57  ;;  %v2642_v57 = vcombine.high %v632_v46, %v636_v47  ;;  %v712_v39 = vld [vmem:[#allocation13 + $0x458] sm:$0xff] }
 0x3db   :  { %v716_v40 = vld [vmem:[#allocation13 + $0x478] sm:$0xff] }
 0x3dc   :  { %2334 = vmatpush2.bf16.msra.mxu1 %v2695_v62  ;;  %v752_v62 = vld [vmem:[#allocation13 + $0x598] sm:$0xff] }
 0x3dd   :  { %2375 = vmatpush2.bf16.msra.mxu0 %v2823_v63  ;;  %2335 = vmatprep.subr.bf16.mxu1 %v2688_v0  ;;  %v756_v63 = vld [vmem:[#allocation13 + $0x5b8] sm:$0xff]  ;;  %v2769_v0 = vcombine.low %v760_v48, %v764_v52 }
 0x3de   :  { %2376 = vmatprep.subr.bf16.mxu0 %v2816_v1  ;;  %v2634_v1 = vcombine.high %v624_v59, %v628_v60  ;;  %v2762_v4 = vcombine.high %v752_v62, %v756_v63  ;;  %v580_v46 = vld [vmem:[#allocation13 + $0x38] sm:$0xff] }
 0x3df   :  { %v704_v47 = vld [vmem:[#allocation13 + $0x418] sm:$0xff] }
 0x3e0   :  { %2336 = vmatpush2.bf16.msra.mxu1 %v2687_v6  ;;  %v748_v6 = vld [vmem:[#allocation13 + $0x578] sm:$0xff] }
 0x3e1   :  { %2377 = vmatpush2.bf16.msra.mxu0 %v2815_v7  ;;  %2337 = vmatprep.subr.bf16.mxu1 %v2680_v8  ;;  %v2633_v7 = vcombine.low %v624_v59, %v628_v60  ;;  %v2761_v8 = vcombine.low %v752_v62, %v756_v63  ;;  %v2754_v10 = vcombine.high %v744_v5, %v748_v6  ;;  %v708_v48 = vld [vmem:[#allocation13 + $0x438] sm:$0xff] }
 0x3e2   :  { %2378 = vmatprep.subr.bf16.mxu0 %v2808_v9  ;;  %v2626_v9 = vcombine.high %v616_v2, %v620_v3  ;;  %v700_v59 = vld [vmem:[#allocation13 + $0x3f8] sm:$0xff]  ;;  %v2713_v63 = vcombine.low %v704_v47, %v708_v48 }
 0x3e3   :  { %v824_v60 = vld [vmem:[#allocation13 + $0x7d8] sm:$0xff] }
 0x3e4   :  { %2338 = vmatpush2.bf16.msra.mxu1 %v2679_v14  ;;  %v740_v14 = vld [vmem:[#allocation13 + $0x538] sm:$0xff] }
 0x3e5   :  { %2379 = vmatpush2.bf16.msra.mxu0 %v2807_v15  ;;  %2339 = vmatprep.subr.bf16.mxu1 %v2672_v16  ;;  %v2625_v15 = vcombine.low %v616_v2, %v620_v3  ;;  %v2753_v16 = vcombine.low %v744_v5, %v748_v6  ;;  %v688_v2 = vld [vmem:[#allocation13 + $0x398] sm:$0xff] }
 0x3e6   :  { %2380 = vmatprep.subr.bf16.mxu0 %v2800_v18  ;;  %v2618_v18 = vcombine.high %v608_v11, %v612_v12  ;;  %v692_v3 = vld [vmem:[#allocation13 + $0x3b8] sm:$0xff] }
 0x3e7   :  { %v820_v5 = vld [vmem:[#allocation13 + $0x7b8] sm:$0xff] }
 0x3e8   :  { %2340 = vmatpush2.bf16.msra.mxu1 %v2671_v26  ;;  %v2745_v26 = vcombine.low %v736_v13, %v740_v14 }
 0x3e9   :  { %2381 = vmatpush2.bf16.msra.mxu0 %v2799_v27  ;;  %2341 = vmatprep.subr.bf16.mxu1 %v2664_v28  ;;  %v2610_v27 = vcombine.high %v600_v19, %v604_v20  ;;  %v2738_v28 = vcombine.high %v728_v24, %v732_v25  ;;  %v676_v19 = vld [vmem:[#allocation13 + $0x338] sm:$0xff] }
 0x3ea   :  { %2382 = vmatprep.subr.bf16.mxu0 %v2792_v29  ;;  %v592_v29 = vld [vmem:[#allocation13 + $0x98] sm:$0xff] }
 0x3eb   :  { %v2601_v41 = vcombine.low %v592_v29, %v596_v30  ;;  %v800_v20 = vld [vmem:[#allocation13 + $0x718] sm:$0xff] }
 0x3ec   :  { %2342 = vmatpush2.bf16.msra.mxu1 %v2663_v34  ;;  %v2737_v34 = vcombine.low %v728_v24, %v732_v25  ;;  %v804_v24 = vld [vmem:[#allocation13 + $0x738] sm:$0xff] }
 0x3ed   :  { %2383 = vmatpush2.bf16.msra.mxu0 %v2791_v35  ;;  %2343 = vmatprep.subr.bf16.mxu1 %v2656_v36  ;;  %v2602_v35 = vcombine.high %v592_v29, %v596_v30  ;;  %v2730_v36 = vcombine.high %v720_v31, %v724_v32  ;;  %v668_v29 = vld [vmem:[#allocation13 + $0x2f8] sm:$0xff] }
 0x3ee   :  { %2384 = vmatprep.subr.bf16.mxu0 %v2784_v37  ;;  %v584_v37 = vld [vmem:[#allocation13 + $0x58] sm:$0xff] }
 0x3ef   :  { %v2593_v52 = vcombine.low %v584_v37, %v588_v38  ;;  %v792_v30 = vld [vmem:[#allocation13 + $0x6d8] sm:$0xff] }
 0x3f0   :  { %2344 = vmatpush2.bf16.msra.mxu1 %v2655_v42  ;;  %v2729_v42 = vcombine.low %v720_v31, %v724_v32  ;;  %v796_v31 = vld [vmem:[#allocation13 + $0x6f8] sm:$0xff] }
 0x3f1   :  { %2385 = vmatpush2.bf16.msra.mxu0 %v2783_v43  ;;  %2345 = vmatprep.subr.bf16.mxu1 %v2648_v44  ;;  %v2594_v43 = vcombine.high %v584_v37, %v588_v38  ;;  %v2722_v44 = vcombine.high %v712_v39, %v716_v40  ;;  %v660_v37 = vld [vmem:[#allocation13 + $0x2b8] sm:$0xff] }
 0x3f2   :  { %2386 = vmatprep.subr.bf16.mxu0 %v2776_v45  ;;  %v576_v45 = vld [vmem:[#allocation13 + $0x18] sm:$0xff] }
 0x3f3   :  { %v2585_v62 = vcombine.low %v576_v45, %v580_v46  ;;  %v784_v38 = vld [vmem:[#allocation13 + $0x698] sm:$0xff] }
 0x3f4   :  { %2346 = vmatpush2.bf16.msra.mxu1 %v2647_v55  ;;  %v2721_v55 = vcombine.low %v712_v39, %v716_v40  ;;  %v788_v39 = vld [vmem:[#allocation13 + $0x6b8] sm:$0xff] }
 0x3f5   :  { %2387 = vmatpush2.bf16.msra.mxu0 %v2775_v56  ;;  %2397 = vmatprep.subr.bf16.mxu1 %v2642_v57  ;;  %v2586_v56 = vcombine.high %v576_v45, %v580_v46  ;;  %v2714_v57 = vcombine.high %v704_v47, %v708_v48  ;;  %v652_v45 = vld [vmem:[#allocation13 + $0x278] sm:$0xff] }
 0x3f6   :  { %2438 = vmatprep.subr.bf16.mxu0 %v2770_v58  ;;  %v696_v58 = vld [vmem:[#allocation13 + $0x3d8] sm:$0xff] }
 0x3f7   :  { %2348 = vmatmul.mubr.bf16.vlgmr.msra.gmra.mxu1 %v3215_v21  ;;  %v2705_v6 = vcombine.low %v696_v58, %v700_v59  ;;  %v776_v46 = vld [vmem:[#allocation13 + $0x658] sm:$0xff] }
 0x3f8   :  { %2389 = vmatmul.mubr.bf16.vlgmr.msra.gmra.mxu0 %v3219_v23  ;;  %2398 = vmatpush1.bf16.msra.mxu1 %v2641_v61  ;;  %v828_v61 = vld [vmem:[#allocation13 + $0x7f8] sm:$0xff] }
 0x3f9   :  { %2429 = vmatprep.mubr.bf16.mxu1 %v3213_v17  ;;  %2439 = vmatpush1.bf16.msra.mxu0 %v2769_v0  ;;  %v2746_v17 = vcombine.high %v736_v13, %v740_v14  ;;  %v2706_v0 = vcombine.high %v696_v58, %v700_v59  ;;  %v812_v13 = vld [vmem:[#allocation13 + $0x778] sm:$0xff]  ;;  %v2697_v14 = vcombine.low %v688_v2, %v692_v3 }
 0x3fa   :  { %2470 = vmatprep.mubr.bf16.mxu0 %v3217_v22  ;;  %2399 = vmatprep.subr.bf16.mxu1 %v2634_v1  ;;  %v2617_v22 = vcombine.low %v608_v11, %v612_v12  ;;  %v2834_v1 = vcombine.high %v824_v60, %v828_v61  ;;  %v684_v11 = vld [vmem:[#allocation13 + $0x378] sm:$0xff] }
 0x3fb   :  { %2440 = vmatprep.subr.bf16.mxu0 %v2762_v4  ;;  %v816_v4 = vld [vmem:[#allocation13 + $0x798] sm:$0xff] }
 0x3fc   :  { %2400 = vmatpush1.bf16.msra.mxu1 %v2633_v7  ;;  %v2833_v7 = vcombine.low %v824_v60, %v828_v61  ;;  %v808_v12 = vld [vmem:[#allocation13 + $0x758] sm:$0xff] }
 0x3fd   :  { %2441 = vmatpush1.bf16.msra.mxu0 %v2761_v8  ;;  %2401 = vmatprep.subr.bf16.mxu1 %v2626_v9  ;;  %v2698_v8 = vcombine.high %v688_v2, %v692_v3  ;;  %v2826_v9 = vcombine.high %v816_v4, %v820_v5  ;;  %v780_v47 = vld [vmem:[#allocation13 + $0x678] sm:$0xff]  ;;  %v3238_v3 = vld [vmem:[%s3286_s11] sm:$0xff]  ;;  %s3081_s11 = smov [#allocation15]  }
 0x3fe   :  { %2442 = vmatprep.subr.bf16.mxu0 %v2754_v10  ;;  %v680_v10 = vld [vmem:[#allocation13 + $0x358] sm:$0xff]  ;;  %s2546_s25 = sshll.u32 %s3081_s11, 4  ;;  %s2547_s25 = int_to_ptr.vmem [resolvable:$true] %s2546_s25 }
 0x3ff   :  { %v2689_v25 = vcombine.low %v680_v10, %v684_v11  ;;  %v644_v58 = vld [vmem:[#allocation13 + $0x238] sm:$0xff]  ;;  %s3033_s26 = scalar_lea.vmem %s2547_s25, 512  ;;  %p3038_p3 = scmp.lt.s32.totalorder %s2547_s25, %s2547_s25 }
 0x400   :  { %2402 = vmatpush1.bf16.msra.mxu1 %v2625_v15  ;;  %v2825_v15 = vcombine.low %v816_v4, %v820_v5  ;;  %v768_v59 = vld [vmem:[#allocation13 + $0x618] sm:$0xff]  ;;  %v834_v4 = vrot.slane %v3238_v3, %v413_v50  ;;  %v838_v5 = vrot.slane %v3238_v3, %v417_v53  ;;  %p3034_p2 = scmp.ne.s32.totalorder %s2547_s25, %s3033_s26  ;;  %p3039_p4 = scmp.lt.s32.totalorder %s3033_s26, %s3033_s26 }
 0x401   :  { %2443 = vmatpush1.bf16.msra.mxu0 %v2753_v16  ;;  %2403 = vmatprep.subr.bf16.mxu1 %v2618_v18  ;;  %v2690_v16 = vcombine.high %v680_v10, %v684_v11  ;;  %v2818_v18 = vcombine.high %v808_v12, %v812_v13  ;;  %v772_v60 = vld [vmem:[#allocation13 + $0x638] sm:$0xff] }
 0x402   :  { %2444 = vmatprep.subr.bf16.mxu0 %v2746_v17  ;;  %v672_v17 = vld [vmem:[#allocation13 + $0x318] sm:$0xff]  ;;  %v2777_v2 = vcombine.low %v768_v59, %v772_v60  ;;  %p3040_p5 = por %p3039_p4, %p3038_p3 }
 0x403   :  { %v2681_v32 = vcombine.low %v672_v17, %v676_v19 }
 0x404   :  { %2404 = vmatpush1.bf16.msra.mxu1 %v2617_v22  ;;  %v2817_v22 = vcombine.low %v808_v12, %v812_v13  ;;  %p3041_p6 = pnand %p3040_p5, %p3034_p2 }
 0x405   :  { %2445 = vmatpush1.bf16.msra.mxu0 %v2745_v26  ;;  %2405 = vmatprep.subr.bf16.mxu1 %v2610_v27  ;;  %v2682_v26 = vcombine.high %v672_v17, %v676_v19  ;;  %v2810_v27 = vcombine.high %v800_v20, %v804_v24 }
 0x406   :  { %2446 = vmatprep.subr.bf16.mxu0 %v2738_v28  ;;  %v664_v28 = vld [vmem:[#allocation13 + $0x2d8] sm:$0xff] }
 0x407   :  { %v2673_v40 = vcombine.low %v664_v28, %v668_v29 }
 0x408   :  { %2406 = vmatpush1.bf16.msra.mxu1 %v2609_v33  ;;  %v2809_v33 = vcombine.low %v800_v20, %v804_v24  ;;  %v842_v20 = vrot.slane %v3238_v3, %v421_v51  ;;  %v846_v24 = vrot.slane %v3238_v3, %v425_v54 }
 0x409   :  { %2447 = vmatpush1.bf16.msra.mxu0 %v2737_v34  ;;  %2407 = vmatprep.subr.bf16.mxu1 %v2602_v35  ;;  %v2674_v34 = vcombine.high %v664_v28, %v668_v29  ;;  %v2802_v35 = vcombine.high %v792_v30, %v796_v31 }
 0x40a   :  { %2448 = vmatprep.subr.bf16.mxu0 %v2730_v36  ;;  %v656_v36 = vld [vmem:[#allocation13 + $0x298] sm:$0xff] }
 0x40b   :  { %v2665_v48 = vcombine.low %v656_v36, %v660_v37 }
 0x40c   :  { %2408 = vmatpush1.bf16.msra.mxu1 %v2601_v41  ;;  %v2801_v41 = vcombine.low %v792_v30, %v796_v31 }
 0x40d   :  { %2449 = vmatpush1.bf16.msra.mxu0 %v2729_v42  ;;  %2409 = vmatprep.subr.bf16.mxu1 %v2594_v43  ;;  %v2666_v42 = vcombine.high %v656_v36, %v660_v37  ;;  %v2794_v43 = vcombine.high %v784_v38, %v788_v39 }
 0x40e   :  { %2450 = vmatprep.subr.bf16.mxu0 %v2722_v44  ;;  %v648_v44 = vld [vmem:[#allocation13 + $0x258] sm:$0xff] }
 0x40f   :  { %v2657_v61 = vcombine.low %v648_v44, %v652_v45 }
 0x410   :  { %2410 = vmatpush1.bf16.msra.mxu1 %v2593_v52  ;;  %v2793_v52 = vcombine.low %v784_v38, %v788_v39  ;;  %v849_v39 = vsub.s32 4, %v3196_v49 }
 0x411   :  { %2451 = vmatpush1.bf16.msra.mxu0 %v2721_v55  ;;  %2411 = vmatprep.subr.bf16.mxu1 %v2586_v56  ;;  %v2658_v55 = vcombine.high %v648_v44, %v652_v45  ;;  %v2786_v56 = vcombine.high %v776_v46, %v780_v47 }
 0x412   :  { %2452 = vmatprep.subr.bf16.mxu0 %v2714_v57  ;;  %v640_v57 = vld [vmem:[#allocation13 + $0x218] sm:$0xff] }
 0x414   :  { %2412 = vmatpush1.bf16.msra.mxu1 %v2585_v62  ;;  %v2785_v62 = vcombine.low %v776_v46, %v780_v47 }
 0x415   :  { %2453 = vmatpush1.bf16.msra.mxu0 %v2713_v63  ;;  %2413 = vmatprep.subr.bf16.mxu1 %v2706_v0  ;;  %v2650_v63 = vcombine.high %v640_v57, %v644_v58  ;;  %v2778_v0 = vcombine.high %v768_v59, %v772_v60 }
 0x416   :  { %2454 = vmatprep.subr.bf16.mxu0 %v2834_v1  ;;  %v2649_v1 = vcombine.low %v640_v57, %v644_v58 }
 0x418   :  { %2414 = vmatpush2.bf16.msra.mxu1 %v2705_v6 }
 0x419   :  { %2455 = vmatpush2.bf16.msra.mxu0 %v2833_v7  ;;  %2415 = vmatprep.subr.bf16.mxu1 %v2698_v8 }
 0x41a   :  { %2456 = vmatprep.subr.bf16.mxu0 %v2826_v9  ;;  %v3248_v9 = vstv %s2562_s24 }
 0x41c   :  { %2416 = vmatpush2.bf16.msra.mxu1 %v2697_v14 }
 0x41d   :  { %2457 = vmatpush2.bf16.msra.mxu0 %v2825_v15  ;;  %2417 = vmatprep.subr.bf16.mxu1 %v2690_v16 }
 0x41e   :  { %2458 = vmatprep.subr.bf16.mxu0 %v2818_v18 }
 0x420   :  { %2418 = vmatpush2.bf16.msra.mxu1 %v2689_v25 }
 0x421   :  { %2459 = vmatpush2.bf16.msra.mxu0 %v2817_v22  ;;  %2419 = vmatprep.subr.bf16.mxu1 %v2682_v26 }
 0x422   :  { %2460 = vmatprep.subr.bf16.mxu0 %v2810_v27 }
 0x424   :  { %2420 = vmatpush2.bf16.msra.mxu1 %v2681_v32 }
 0x425   :  { %2461 = vmatpush2.bf16.msra.mxu0 %v2809_v33  ;;  %2421 = vmatprep.subr.bf16.mxu1 %v2674_v34 }
 0x426   :  { %2462 = vmatprep.subr.bf16.mxu0 %v2802_v35 }
 0x428   :  { %2422 = vmatpush2.bf16.msra.mxu1 %v2673_v40  ;;  %v853_v40 = vsub.s32 5, %v3196_v49 }
 0x429   :  { %2463 = vmatpush2.bf16.msra.mxu0 %v2801_v41  ;;  %2423 = vmatprep.subr.bf16.mxu1 %v2666_v42  ;;  %v850_v41 = vrot.slane %v3238_v3, %v849_v39 }
 0x42a   :  { %2464 = vmatprep.subr.bf16.mxu0 %v2794_v43  ;;  %v854_v42 = vrot.slane %v3238_v3, %v853_v40 }
 0x42c   :  { %2424 = vmatpush2.bf16.msra.mxu1 %v2665_v48 }
 0x42d   :  { %2465 = vmatpush2.bf16.msra.mxu0 %v2793_v52  ;;  %2425 = vmatprep.subr.bf16.mxu1 %v2658_v55 }
 0x42e   :  { %2466 = vmatprep.subr.bf16.mxu0 %v2786_v56 }
 0x430   :  { %2426 = vmatpush2.bf16.msra.mxu1 %v2657_v61 }
 0x431   :  { %2467 = vmatpush2.bf16.msra.mxu0 %v2785_v62  ;;  %2427 = vmatprep.subr.bf16.mxu1 %v2650_v63 }
 0x432   :  { %2468 = vmatprep.subr.bf16.mxu0 %v2778_v0 }
 0x434   :  { %2428 = vmatpush2.bf16.msra.mxu1 %v2649_v1  ;;  %v857_v1 = vsub.s32 6, %v3196_v49 }
 0x435   :  { %2469 = vmatpush2.bf16.msra.mxu0 %v2777_v2  ;;  %v861_v2 = vsub.s32 7, %v3196_v49 }
 0x437   :  { %2430 = vmatmul.mubr.bf16.vlgmr.msra.gmra.mxu1 %v3215_v21  ;;  %v2185_v6 = vpop.f32.mrf.mxu1 }
 0x438   :  { %2471 = vmatmul.mubr.bf16.vlgmr.msra.gmra.mxu0 %v3219_v23  ;;  %v2186_v7 = vadd.f32 %v2185_v6, %v834_v4  ;;  %v2226_v8 = vpop.f32.mrf.mxu0  ;;  %v858_v4 = vrot.slane %v3238_v3, %v857_v1 }
 0x439   :  { %v2187_v10 = vpop.f32.mrf.mxu1 }
 0x43a   :  { %v2227_v11 = vadd.f32 %v2226_v8, %v2186_v7  ;;  %v2188_v12 = vadd.f32 %v2187_v10, %v838_v5  ;;  %v2228_v13 = vpop.f32.mrf.mxu0  ;;  %v862_v5 = vrot.slane %v3238_v3, %v861_v2 }
 0x43b   :  { %v2189_v14 = vpop.f32.mrf.mxu1 }
 0x43c   :  { %v2488_v50 = vmul.f32 %v3248_v9, %v2227_v11  ;;  %v2229_v15 = vadd.f32 %v2228_v13, %v2188_v12  ;;  %v2230_v16 = vpop.f32.mrf.mxu0  ;;  %vm2479_vm11 = vcmp.ge.f32.partialorder %v2227_v11, 0.0 }
 0x43d   :  { %v2190_v53 = vpop.f32.mrf.mxu1 }
 0x43e   :  { %vm2480_vm12 = vcmp.ge.f32.partialorder %v2229_v15, 0.0  ;;  %v2489_v21 = vmul.f32 %v3248_v9, %v2229_v15  ;;  %v2231_v18 = vpop.f32.mrf.mxu0  ;;  %v2496_v23 = vsel %vm2479_vm11, %v2227_v11, %v2488_v50 }
 0x440   :  { %v2497_v17 = vsel %vm2480_vm12, %v2229_v15, %v2489_v21 }
 0x441   :  { %v2839_v19 = vpack.c.bf16 %v2497_v17, %v2496_v23 }
 0x443   :  { %2536 = vst [vmem:[#allocation15] sm:$0xff] %v2839_v19 }
 0x477   :  { %v2267_v25 = vpop.f32.mrf.mxu1 }
 0x478   :  { %v2268_v22 = vadd.f32 %v2267_v25, %v842_v20  ;;  %v2308_v26 = vpop.f32.mrf.mxu0 }
 0x479   :  { %v2269_v27 = vpop.f32.mrf.mxu1 }
 0x47a   :  { %v2309_v28 = vadd.f32 %v2308_v26, %v2268_v22  ;;  %v2270_v29 = vadd.f32 %v2269_v27, %v846_v24  ;;  %v2310_v30 = vpop.f32.mrf.mxu0 }
 0x47b   :  { %v2271_v31 = vpop.f32.mrf.mxu1 }
 0x47c   :  { %v2490_v32 = vmul.f32 %v3248_v9, %v2309_v28  ;;  %v2311_v33 = vadd.f32 %v2310_v30, %v2270_v29  ;;  %v2312_v34 = vpop.f32.mrf.mxu0  ;;  %vm2481_vm13 = vcmp.ge.f32.partialorder %v2309_v28, 0.0 }
 0x47d   :  { %v2272_v35 = vpop.f32.mrf.mxu1 }
 0x47e   :  { %vm2482_vm14 = vcmp.ge.f32.partialorder %v2311_v33, 0.0  ;;  %v2491_v51 = vmul.f32 %v3248_v9, %v2311_v33  ;;  %v2313_v36 = vpop.f32.mrf.mxu0  ;;  %v2498_v37 = vsel %vm2481_vm13, %v2309_v28, %v2490_v32 }
 0x480   :  { %v2499_v54 = vsel %vm2482_vm14, %v2311_v33, %v2491_v51 }
 0x481   :  { %v2840_v38 = vpack.c.bf16 %v2499_v54, %v2498_v37 }
 0x483   :  { %2537 = vst [vmem:[#allocation15 + $0x8] sm:$0xff] %v2840_v38 }
 0x4b7   :  { %v2349_v43 = vpop.f32.mrf.mxu1 }
 0x4b8   :  { %v2350_v44 = vadd.f32 %v2349_v43, %v850_v41  ;;  %v2390_v45 = vpop.f32.mrf.mxu0 }
 0x4b9   :  { %v2351_v46 = vpop.f32.mrf.mxu1 }
 0x4ba   :  { %v2391_v47 = vadd.f32 %v2390_v45, %v2350_v44  ;;  %v2352_v48 = vadd.f32 %v2351_v46, %v854_v42  ;;  %v2392_v52 = vpop.f32.mrf.mxu0 }
 0x4bb   :  { %v2353_v55 = vpop.f32.mrf.mxu1 }
 0x4bc   :  { %v2492_v56 = vmul.f32 %v3248_v9, %v2391_v47  ;;  %v2393_v57 = vadd.f32 %v2392_v52, %v2352_v48  ;;  %v2394_v58 = vpop.f32.mrf.mxu0  ;;  %vm2483_vm15 = vcmp.ge.f32.partialorder %v2391_v47, 0.0 }
 0x4bd   :  { %v2354_v59 = vpop.f32.mrf.mxu1 }
 0x4be   :  { %vm2484_vm0 = vcmp.ge.f32.partialorder %v2393_v57, 0.0  ;;  %v2493_v60 = vmul.f32 %v3248_v9, %v2393_v57  ;;  %v2395_v61 = vpop.f32.mrf.mxu0  ;;  %v2500_v62 = vsel %vm2483_vm15, %v2391_v47, %v2492_v56 }
 0x4c0   :  { %v2501_v63 = vsel %vm2484_vm0, %v2393_v57, %v2493_v60 }
 0x4c1   :  { %v2841_v0 = vpack.c.bf16 %v2501_v63, %v2500_v62 }
 0x4c3   :  { %2538 = vst [vmem:[#allocation15 + $0x10] sm:$0xff] %v2841_v0 }
 0x4f7   :  { %v2431_v6 = vpop.f32.mrf.mxu1 }
 0x4f8   :  { %v2432_v7 = vadd.f32 %v2431_v6, %v858_v4  ;;  %v2472_v8 = vpop.f32.mrf.mxu0 }
 0x4f9   :  { %v2433_v10 = vpop.f32.mrf.mxu1 }
 0x4fa   :  { %v2473_v11 = vadd.f32 %v2472_v8, %v2432_v7  ;;  %v2434_v12 = vadd.f32 %v2433_v10, %v862_v5  ;;  %v2474_v13 = vpop.f32.mrf.mxu0 }
 0x4fb   :  { %v2435_v14 = vpop.f32.mrf.mxu1 }
 0x4fc   :  { %v2494_v50 = vmul.f32 %v3248_v9, %v2473_v11  ;;  %v2475_v15 = vadd.f32 %v2474_v13, %v2434_v12  ;;  %v2476_v16 = vpop.f32.mrf.mxu0  ;;  %vm2485_vm1 = vcmp.ge.f32.partialorder %v2473_v11, 0.0 }
 0x4fd   :  { %v2436_v53 = vpop.f32.mrf.mxu1 }
 0x4fe   :  { %vm2486_vm2 = vcmp.ge.f32.partialorder %v2475_v15, 0.0  ;;  %v2495_v49 = vmul.f32 %v3248_v9, %v2475_v15  ;;  %v2477_v21 = vpop.f32.mrf.mxu0  ;;  %v2502_v3 = vsel %vm2485_vm1, %v2473_v11, %v2494_v50 }
 0x500   :  { %v2503_v18 = vsel %vm2486_vm2, %v2475_v15, %v2495_v49 }
 0x501   :  { %v2842_v23 = vpack.c.bf16 %v2503_v18, %v2502_v3 }
 0x503   :  { %2539 = vst [vmem:[#allocation15 + $0x18] sm:$0xff] %v2842_v23 }
 0x504   :  { %3044 = shalt.err (!%p3041_p6)
}
 0x505   :  { %2549 = dma.vmem_to_hbm [thread:$0]  %s2547_s25, 512, %s3287_s12, [#allocation4]  }
 0x506   :  { %3063 = dma.done.wait [#allocation4], 512  }
 0x507   :  { %3064 = vsyncadd [#allocation4], 4294966784 }
 0x508   :  { %2553 = vsyncpa [#allocation3], 1 }
 0x509   :  { %2554 = vsyncpa [#allocation8], 1 }
 0x50a   :  { %2555 = vsyncpa [#allocation11], 1 }
 0x50b   :  { %2556 = vsyncpa [#allocation14], 1 }
 0x50c   :  { %2557 = vsyncpa [#allocation4], 1 }
 0x50d   :  { %2558 = vsyncpa [#allocation5], 1 }

</bundles_post_ra>
